<compile_context>
chip_gen: v6e
topology: v6e:2x2x1
jax: 0.10.0
libtpu: 0.0.40
codegen_flags: <defaults>
</compile_context>

<pallas_src>
import jax
import jax.numpy as jnp
from jax.experimental import pallas as pl
from jax.experimental.pallas import tpu as pltpu

FEATURE_DIM = 1920   # self.feature_dim in the PyTorch module
LANE = 128
SUBLANE = 8
MAX_BATCH_TILE = 64  # bound on the static in-kernel unroll over the batch tile


def _head_kernel(x_ref, w_ref, b_ref, o_ref):
    # x_ref : (b_tile, C, HW)     feature tile in natural NCHW layout
    #                             (C on sublanes, HW on lanes)
    # w_ref : (NC_P, C)           classifier weight * (1/HW), NC sublane-padded
    # b_ref : (NC_P, 1)           classifier bias (sublane-padded)
    # o_ref : (1, NC_P, b_tile)   per-tile logits, batch on lanes
    #
    # AdaptiveAvgPool2d(1) + Linear fused:
    #   logits[n] = sum_h ((w/HW) @ x_b)[n, h] + bias[n]
    # The C contraction runs on the MXU directly from x's natural layout (no
    # transposes); only a tiny (NC_P, HW) lane-sum is left for the XLU.
    # Dropout(0.5) is identity at inference time.
    w = w_ref[...]
    bias = b_ref[...]
    for i in range(x_ref.shape[0]):                                     # static unroll
        s = jnp.dot(w, x_ref[i], preferred_element_type=jnp.float32)    # (NC_P, HW)  MXU
        col = jnp.sum(s, axis=1, keepdims=True) + bias                  # (NC_P, 1)   tiny reduce
        o_ref[0, :, i:i + 1] = col.astype(o_ref.dtype)


def _device_kind():
    try:
        return jax.devices()[0].device_kind.lower()
    except Exception:
        return ""


def _vmem_plan():
    """(per-input-buffer budget, explicit scoped-VMEM limit) per TPU generation."""
    kind = _device_kind()
    if "v7" in kind or "7x" in kind:
        return 12 << 20, 44 << 20      # 64 MiB physical per TC -> stay well under ~48 MiB
    if "v6" in kind:
        return 10 << 20, 48 << 20      # 128 MiB physical, 32 MiB default scoped
    return 6 << 20, 32 << 20           # v5e / v5p / unknown: conservative


def _dim_semantics(num_tiles):
    # Real dual-TC sharding only comes from core-parallel semantics (v7x);
    # "parallel" vs "arbitrary" is a measured near-no-op on single-TC parts.
    kind = _device_kind()
    if ("v7" in kind or "7x" in kind) and num_tiles >= 2 and num_tiles % 2 == 0:
        return (pltpu.CORE_PARALLEL,)
    return ("parallel",)


def baseline_single_head(feat_nchw, weight, bias):
    """feat_nchw: (B, C, H, W) backbone output; weight: (NC, C); bias: (NC,)."""
    B, C, H, W = feat_nchw.shape
    NC = weight.shape[0]
    assert C == weight.shape[1]
    HW = H * W
    NC_P = max(SUBLANE, ((NC + SUBLANE - 1) // SUBLANE) * SUBLANE)

    # Free reshape (no transpose, no extra HBM pass): NCHW -> (B, C, HW).
    x = feat_nchw.reshape(B, C, HW)

    # Keep the classifier weight in its native (NC, C) orientation (MXU LHS),
    # fold in the 1/HW pooling scale, and pad NC up to 8 sublanes only.  The
    # whole weight is then ~NC_P*C*4 bytes and trivially VMEM-resident.
    # (For a bf16 backbone feature map, pass x as bf16: the dot promotes to
    #  f32 in-kernel, halving HBM traffic on this read-bound head.)
    w = jnp.pad(weight.astype(jnp.float32) * (1.0 / HW), ((0, NC_P - NC), (0, 0)))
    b = jnp.pad(bias.astype(jnp.float32), (0, NC_P - NC)).reshape(NC_P, 1)

    # VMEM-aware batch tiling: account for lane padding of HW (-> mult of 128)
    # and sublane padding of C; take the largest batch tile that fits the
    # per-buffer budget (the BlockSpec pipeline double-buffers the x tile).
    hw_pad = ((HW + LANE - 1) // LANE) * LANE
    c_pad = ((C + SUBLANE - 1) // SUBLANE) * SUBLANE
    per_batch_vmem = c_pad * hw_pad * x.dtype.itemsize
    budget, vmem_limit = _vmem_plan()
    b_tile = int(max(1, min(B, budget // max(per_batch_vmem, 1), MAX_BATCH_TILE)))
    num_tiles = int(pl.cdiv(B, b_tile))
    # A partial final tile (B % b_tile != 0) reads undefined rows past B; those
    # rows only feed logit columns >= B, which are sliced off below.

    cost = pl.CostEstimate(
        flops=2 * B * NC_P * C * HW + B * NC_P * HW,
        transcendentals=0,
        bytes_accessed=(x.size * x.dtype.itemsize + w.size * 4 + b.size * 4
                        + num_tiles * b_tile * NC_P * 4),
    )

    out = pl.pallas_call(
        _head_kernel,
        out_shape=jax.ShapeDtypeStruct((num_tiles, NC_P, b_tile), jnp.float32),
        grid=(num_tiles,),
        in_specs=[
            pl.BlockSpec((b_tile, C, HW), lambda i: (i, 0, 0)),
            pl.BlockSpec((NC_P, C), lambda i: (0, 0)),    # resident (tiny) weight
            pl.BlockSpec((NC_P, 1), lambda i: (0, 0)),    # resident bias
        ],
        out_specs=pl.BlockSpec((1, NC_P, b_tile), lambda i: (i, 0, 0)),
        compiler_params=pltpu.CompilerParams(
            dimension_semantics=_dim_semantics(num_tiles),
            vmem_limit_bytes=vmem_limit,
        ),
        cost_estimate=cost,
    )(x, w, b)

    # Tiny logits array: (num_tiles, NC_P, b_tile) -> (B, NC).
    logits = jnp.transpose(out, (0, 2, 1)).reshape(num_tiles * b_tile, NC_P)
    return logits[:B, :NC]


def _reference(feat_nchw, weight, bias):
    pooled = jnp.mean(feat_nchw.astype(jnp.float32), axis=(2, 3))   # (B, C)
    return pooled @ weight.T.astype(jnp.float32) + bias.astype(jnp.float32)


if __name__ == "__main__":
    key = jax.random.PRNGKey(0)
    k_feat, k_w, k_b = jax.random.split(key, 3)

    B, C, H, W = 2, FEATURE_DIM, 8, 8
    num_classes = 4

    # Deterministic synthetic backbone feature map (stands in for densenet201 output).
    feat = jax.random.normal(k_feat, (B, C, H, W), dtype=jnp.float32)

    # Deterministic classifier parameters (nn.Linear(1920, num_classes) shapes).
    bound = 1.0 / (C ** 0.5)
    weight = jax.random.uniform(k_w, (num_classes, C), minval=-bound, maxval=bound,
                                dtype=jnp.float32)
    bias = jax.random.uniform(k_b, (num_classes,), minval=-bound, maxval=bound,
                              dtype=jnp.float32)

    ys = jax.block_until_ready(baseline_single_head(feat, weight, bias))

    ref = _reference(feat, weight, bias)
    assert ys.shape == (B, num_classes)
    # Tolerance covers TPU default-precision f32 MXU passes.
    assert jnp.allclose(ys, ref, atol=1e-3, rtol=1e-3), "mismatch vs. reference"

    print("KERNEL_OK")
</pallas_src>

<mosaic_0001>
module attributes {stable_mosaic.version = 11 : i64} {
  func.func @_head_kernel(%arg0: i32, %arg1: memref<2x1920x64xf32, #tpu.memory_space<vmem>>, %arg2: memref<8x1920xf32, #tpu.memory_space<vmem>>, %arg3: memref<8x1xf32, #tpu.memory_space<vmem>>, %arg4: memref<1x8x2xf32, #tpu.memory_space<vmem>>) attributes {dimension_semantics = [#tpu.dimension_semantics<parallel>], iteration_bounds = array<i64: 1>, scalar_prefetch = 0 : i64, scratch_operands = 0 : i64, tpu.core_type = #tpu.core_type<tc>, window_params = [{transform_indices = @transform_0, window_bounds = array<i64: 2, 1920, 64>}, {pipeline_mode = #tpu.pipeline_mode<synchronous>, transform_indices = @transform_1, window_bounds = array<i64: 8, 1920>}, {pipeline_mode = #tpu.pipeline_mode<synchronous>, transform_indices = @transform_2, window_bounds = array<i64: 8, 1>}, {transform_indices = @transform_3, window_bounds = array<i64: 1, 8, 2>}]} {
    %c0 = arith.constant 0 : index
    %c0_0 = arith.constant 0 : index
    %0 = vector.load %arg2[%c0, %c0_0] : memref<8x1920xf32, #tpu.memory_space<vmem>>, vector<8x1920xf32>
    %c0_1 = arith.constant 0 : index
    %c0_2 = arith.constant 0 : index
    %1 = vector.load %arg3[%c0_1, %c0_2] : memref<8x1xf32, #tpu.memory_space<vmem>>, vector<8x1xf32>
    %c0_3 = arith.constant 0 : index
    %c0_4 = arith.constant 0 : index
    %c0_5 = arith.constant 0 : index
    %2 = vector.load %arg1[%c0_3, %c0_4, %c0_5] : memref<2x1920x64xf32, #tpu.memory_space<vmem>>, vector<1x1920x64xf32>
    %3 = vector.shape_cast %2 : vector<1x1920x64xf32> to vector<1920x64xf32>
    %cst = arith.constant dense<0.000000e+00> : vector<8x64xf32>
    %4 = tpu.matmul %0, %3, %cst {dimension_numbers = #tpu.dot_dimension_numbers<[1], [0], [0], [1], [0, 0, 1, 1], [], []>} : vector<8x1920xf32>, vector<1920x64xf32>, vector<8x64xf32> -> vector<8x64xf32>
    %cst_6 = arith.constant dense<0.000000e+00> : vector<8xf32>
    %5 = vector.multi_reduction <add>, %4, %cst_6 [1] : vector<8x64xf32> to vector<8xf32>
    %6 = vector.shape_cast %5 : vector<8xf32> to vector<8x1xf32>
    %7 = arith.addf %6, %1 : vector<8x1xf32>
    %c0_7 = arith.constant 0 : index
    %c0_8 = arith.constant 0 : index
    %c0_9 = arith.constant 0 : index
    %8 = vector.load %arg4[%c0_7, %c0_8, %c0_9] : memref<1x8x2xf32, #tpu.memory_space<vmem>>, vector<1x8x1xf32>
    %9 = vector.shape_cast %8 : vector<1x8x1xf32> to vector<8x1xf32>
    %10 = vector.shape_cast %7 : vector<8x1xf32> to vector<1x8x1xf32>
    tpu.vector_store %arg4[%c0_7, %c0_8, %c0_9], %10 {strides = array<i32>} : memref<1x8x2xf32, #tpu.memory_space<vmem>>, vector<1x8x1xf32>,
    %c1 = arith.constant 1 : index
    %c0_10 = arith.constant 0 : index
    %c0_11 = arith.constant 0 : index
    %11 = vector.load %arg1[%c1, %c0_10, %c0_11] : memref<2x1920x64xf32, #tpu.memory_space<vmem>>, vector<1x1920x64xf32>
    %12 = vector.shape_cast %11 : vector<1x1920x64xf32> to vector<1920x64xf32>
    %cst_12 = arith.constant dense<0.000000e+00> : vector<8x64xf32>
    %13 = tpu.matmul %0, %12, %cst_12 {dimension_numbers = #tpu.dot_dimension_numbers<[1], [0], [0], [1], [0, 0, 1, 1], [], []>} : vector<8x1920xf32>, vector<1920x64xf32>, vector<8x64xf32> -> vector<8x64xf32>
    %cst_13 = arith.constant dense<0.000000e+00> : vector<8xf32>
    %14 = vector.multi_reduction <add>, %13, %cst_13 [1] : vector<8x64xf32> to vector<8xf32>
    %15 = vector.shape_cast %14 : vector<8xf32> to vector<8x1xf32>
    %16 = arith.addf %15, %1 : vector<8x1xf32>
    %c0_14 = arith.constant 0 : index
    %c0_15 = arith.constant 0 : index
    %c1_16 = arith.constant 1 : index
    %17 = vector.load %arg4[%c0_14, %c0_15, %c1_16] : memref<1x8x2xf32, #tpu.memory_space<vmem>>, vector<1x8x1xf32>
    %18 = vector.shape_cast %17 : vector<1x8x1xf32> to vector<8x1xf32>
    %19 = vector.shape_cast %16 : vector<8x1xf32> to vector<1x8x1xf32>
    tpu.vector_store %arg4[%c0_14, %c0_15, %c1_16], %19 {strides = array<i32>} : memref<1x8x2xf32, #tpu.memory_space<vmem>>, vector<1x8x1xf32>,
    return
  }
  func.func @transform_0(%arg0: i32) -> (i32, i32, i32) {
    %c0_i32 = arith.constant 0 : i32
    %c0_i32_0 = arith.constant 0 : i32
    %c0_i32_1 = arith.constant 0 : i32
    return %arg0, %c0_i32, %c0_i32_0 : i32, i32, i32
  }
  func.func @transform_1(%arg0: i32) -> (i32, i32) {
    %c0_i32 = arith.constant 0 : i32
    %c0_i32_0 = arith.constant 0 : i32
    %c0_i32_1 = arith.constant 0 : i32
    return %c0_i32, %c0_i32_0 : i32, i32
  }
  func.func @transform_2(%arg0: i32) -> (i32, i32) {
    %c0_i32 = arith.constant 0 : i32
    %c0_i32_0 = arith.constant 0 : i32
    %c0_i32_1 = arith.constant 0 : i32
    return %c0_i32, %c0_i32_0 : i32, i32
  }
  func.func @transform_3(%arg0: i32) -> (i32, i32, i32) {
    %c0_i32 = arith.constant 0 : i32
    %c0_i32_0 = arith.constant 0 : i32
    %c0_i32_1 = arith.constant 0 : i32
    return %arg0, %c0_i32, %c0_i32_0 : i32, i32, i32
  }
}

</mosaic_0001>

<bundles_post_ra>
// kernel: tpu_custom_call.1
= control target key start
LH: loop header
LB: loop body
LE: loop exit
PB: predicated region body
PF: predicated region fallthrough
CT: control target
= control target key end

     0   :  { %vm2505_vm0 = vmmov 0   ;;  %vm830_vm1 = vcmask 523264   ;;  %s2506_s6 = smov 1   ;;  %vm835_vm2 = vcmask 7168   ;;  %vm1646_vm3 = vcmask 15368   ;;  %s4105_s0 = inlined_call_operand.vmem [shape: f32[2,1920,64], index: 0, kind: input, shape index: {}]   ;;  %s4106_s1 = inlined_call_operand.vmem [shape: f32[8,1920], index: 1, kind: input, shape index: {}]   ;;  %s4107_s2 = inlined_call_operand.vmem [shape: f32[8,1], index: 2, kind: input, shape index: {}]   ;;  %s4108_s3 = inlined_call_operand.vmem [shape: f32[1,8,2], index: 3, kind: output, shape index: {}]  }
   0x1   :  { %v61_v0 = vld [vmem:[%s4105_s0 + $0xf8] sm:$0xff]  ;;  %v60_v4 = vld [vmem:[%s4105_s0 + $0xf0] sm:$0xff]  ;;  %v59_v8 = vld [vmem:[%s4105_s0 + $0xe8] sm:$0xff] }
   0x2   :  { %v93_v1 = vld [vmem:[%s4105_s0 + $0x1f8] sm:$0xff]  ;;  %1892 = vmatprep.subr.mxu0 %v61_v0  ;;  %v92_v5 = vld [vmem:[%s4105_s0 + $0x1f0] sm:$0xff]  ;;  %v91_v9 = vld [vmem:[%s4105_s0 + $0x1e8] sm:$0xff] }
   0x3   :  { %v45_v2 = vld [vmem:[%s4105_s0 + $0x78] sm:$0xff]  ;;  %1927 = vmatprep.subr.mxu1 %v93_v1  ;;  %v44_v6 = vld [vmem:[%s4105_s0 + $0x70] sm:$0xff]  ;;  %v43_v10 = vld [vmem:[%s4105_s0 + $0x68] sm:$0xff] }
   0x4   :  { %v77_v3 = vld [vmem:[%s4105_s0 + $0x178] sm:$0xff]  ;;  %1893 = vmatpush3.msra.mxu0 %v45_v2  ;;  %v76_v7 = vld [vmem:[%s4105_s0 + $0x170] sm:$0xff]  ;;  %v75_v11 = vld [vmem:[%s4105_s0 + $0x168] sm:$0xff] }
   0x5   :  { %1928 = vmatpush3.msra.mxu1 %v77_v3  ;;  %1894 = vmatprep.subr.mxu0 %v60_v4  ;;  %v58_v12 = vld [vmem:[%s4105_s0 + $0xe0] sm:$0xff]  ;;  %v57_v16 = vld [vmem:[%s4105_s0 + $0xd8] sm:$0xff]  ;;  %v56_v20 = vld [vmem:[%s4105_s0 + $0xd0] sm:$0xff] }
   0x6   :  { %1929 = vmatprep.subr.mxu1 %v92_v5  ;;  %1895 = vmatpush3.msra.mxu0 %v44_v6  ;;  %v90_v13 = vld [vmem:[%s4105_s0 + $0x1e0] sm:$0xff]  ;;  %v89_v17 = vld [vmem:[%s4105_s0 + $0x1d8] sm:$0xff]  ;;  %v88_v21 = vld [vmem:[%s4105_s0 + $0x1d0] sm:$0xff] }
   0x7   :  { %1930 = vmatpush3.msra.mxu1 %v76_v7  ;;  %1896 = vmatprep.subr.mxu0 %v59_v8  ;;  %v42_v14 = vld [vmem:[%s4105_s0 + $0x60] sm:$0xff]  ;;  %v41_v18 = vld [vmem:[%s4105_s0 + $0x58] sm:$0xff]  ;;  %v40_v22 = vld [vmem:[%s4105_s0 + $0x50] sm:$0xff] }
   0x8   :  { %1931 = vmatprep.subr.mxu1 %v91_v9  ;;  %v74_v15 = vld [vmem:[%s4105_s0 + $0x160] sm:$0xff]  ;;  %1897 = vmatpush3.msra.mxu0 %v43_v10  ;;  %v73_v19 = vld [vmem:[%s4105_s0 + $0x158] sm:$0xff]  ;;  %v72_v23 = vld [vmem:[%s4105_s0 + $0x150] sm:$0xff] }
   0x9   :  { %1932 = vmatpush3.msra.mxu1 %v75_v11  ;;  %1898 = vmatprep.subr.mxu0 %v58_v12  ;;  %v55_v24 = vld [vmem:[%s4105_s0 + $0xc8] sm:$0xff]  ;;  %v54_v28 = vld [vmem:[%s4105_s0 + $0xc0] sm:$0xff]  ;;  %v53_v32 = vld [vmem:[%s4105_s0 + $0xb8] sm:$0xff] }
   0xa   :  { %1933 = vmatprep.subr.mxu1 %v90_v13  ;;  %1899 = vmatpush3.msra.mxu0 %v42_v14  ;;  %v87_v25 = vld [vmem:[%s4105_s0 + $0x1c8] sm:$0xff]  ;;  %v86_v29 = vld [vmem:[%s4105_s0 + $0x1c0] sm:$0xff]  ;;  %v85_v33 = vld [vmem:[%s4105_s0 + $0x1b8] sm:$0xff] }
   0xb   :  { %1934 = vmatpush3.msra.mxu1 %v74_v15  ;;  %1900 = vmatprep.subr.mxu0 %v57_v16  ;;  %v39_v26 = vld [vmem:[%s4105_s0 + $0x48] sm:$0xff]  ;;  %v38_v30 = vld [vmem:[%s4105_s0 + $0x40] sm:$0xff]  ;;  %v37_v34 = vld [vmem:[%s4105_s0 + $0x38] sm:$0xff] }
   0xc   :  { %1935 = vmatprep.subr.mxu1 %v89_v17  ;;  %1901 = vmatpush3.msra.mxu0 %v41_v18  ;;  %v71_v27 = vld [vmem:[%s4105_s0 + $0x148] sm:$0xff]  ;;  %v70_v31 = vld [vmem:[%s4105_s0 + $0x140] sm:$0xff]  ;;  %v69_v35 = vld [vmem:[%s4105_s0 + $0x138] sm:$0xff] }
   0xd   :  { %1936 = vmatpush3.msra.mxu1 %v73_v19  ;;  %1902 = vmatprep.subr.mxu0 %v56_v20  ;;  %v52_v36 = vld [vmem:[%s4105_s0 + $0xb0] sm:$0xff]  ;;  %v51_v40 = vld [vmem:[%s4105_s0 + $0xa8] sm:$0xff]  ;;  %v50_v44 = vld [vmem:[%s4105_s0 + $0xa0] sm:$0xff] }
   0xe   :  { %1937 = vmatprep.subr.mxu1 %v88_v21  ;;  %1903 = vmatpush3.msra.mxu0 %v40_v22  ;;  %v84_v37 = vld [vmem:[%s4105_s0 + $0x1b0] sm:$0xff]  ;;  %v83_v41 = vld [vmem:[%s4105_s0 + $0x1a8] sm:$0xff]  ;;  %v82_v45 = vld [vmem:[%s4105_s0 + $0x1a0] sm:$0xff] }
   0xf   :  { %1938 = vmatpush3.msra.mxu1 %v72_v23  ;;  %1904 = vmatprep.subr.mxu0 %v55_v24  ;;  %v36_v38 = vld [vmem:[%s4105_s0 + $0x30] sm:$0xff]  ;;  %v35_v42 = vld [vmem:[%s4105_s0 + $0x28] sm:$0xff]  ;;  %v34_v46 = vld [vmem:[%s4105_s0 + $0x20] sm:$0xff] }
  0x10   :  { %1939 = vmatprep.subr.mxu1 %v87_v25  ;;  %1905 = vmatpush3.msra.mxu0 %v39_v26  ;;  %v68_v39 = vld [vmem:[%s4105_s0 + $0x130] sm:$0xff]  ;;  %v67_v43 = vld [vmem:[%s4105_s0 + $0x128] sm:$0xff]  ;;  %v66_v47 = vld [vmem:[%s4105_s0 + $0x120] sm:$0xff] }
  0x11   :  { %1940 = vmatpush3.msra.mxu1 %v71_v27  ;;  %1906 = vmatprep.subr.mxu0 %v54_v28  ;;  %v49_v48 = vld [vmem:[%s4105_s0 + $0x98] sm:$0xff]  ;;  %v48_v52 = vld [vmem:[%s4105_s0 + $0x90] sm:$0xff]  ;;  %v47_v56 = vld [vmem:[%s4105_s0 + $0x88] sm:$0xff] }
  0x12   :  { %1941 = vmatprep.subr.mxu1 %v86_v29  ;;  %1907 = vmatpush3.msra.mxu0 %v38_v30  ;;  %v81_v49 = vld [vmem:[%s4105_s0 + $0x198] sm:$0xff]  ;;  %v80_v53 = vld [vmem:[%s4105_s0 + $0x190] sm:$0xff]  ;;  %v79_v57 = vld [vmem:[%s4105_s0 + $0x188] sm:$0xff] }
  0x13   :  { %1942 = vmatpush3.msra.mxu1 %v70_v31  ;;  %1908 = vmatprep.subr.mxu0 %v53_v32  ;;  %v33_v50 = vld [vmem:[%s4105_s0 + $0x18] sm:$0xff]  ;;  %v32_v54 = vld [vmem:[%s4105_s0 + $0x10] sm:$0xff]  ;;  %v31_v58 = vld [vmem:[%s4105_s0 + $0x8] sm:$0xff] }
  0x14   :  { %1943 = vmatprep.subr.mxu1 %v85_v33  ;;  %1909 = vmatpush3.msra.mxu0 %v37_v34  ;;  %v65_v51 = vld [vmem:[%s4105_s0 + $0x118] sm:$0xff]  ;;  %v64_v55 = vld [vmem:[%s4105_s0 + $0x110] sm:$0xff]  ;;  %v63_v59 = vld [vmem:[%s4105_s0 + $0x108] sm:$0xff] }
  0x15   :  { %1944 = vmatpush3.msra.mxu1 %v69_v35  ;;  %1910 = vmatprep.subr.mxu0 %v52_v36  ;;  %v46_v60 = vld [vmem:[%s4105_s0 + $0x80] sm:$0xff]  ;;  %v15_v63 = vld [vmem:[%s4106_s1 + $0x8] sm:$0xff]  ;;  %v17_v1 = vld [vmem:[%s4106_s1 + $0x18] sm:$0xff] }
  0x16   :  { %1945 = vmatprep.subr.mxu1 %v84_v37  ;;  %1911 = vmatpush3.msra.mxu0 %v36_v38  ;;  %v78_v61 = vld [vmem:[%s4105_s0 + $0x180] sm:$0xff]  ;;  %v16_v3 = vld [vmem:[%s4106_s1 + $0x10] sm:$0xff]  ;;  %v125_v4 = vld [vmem:[%s4105_s0 + $0x2f8] sm:$0xff] }
  0x17   :  { %1946 = vmatpush3.msra.mxu1 %v68_v39  ;;  %1912 = vmatprep.subr.mxu0 %v51_v40  ;;  %v30_v62 = vld [vmem:[%s4105_s0] sm:$0xff]  ;;  %v157_v5 = vld [vmem:[%s4105_s0 + $0x3f8] sm:$0xff]  ;;  %v124_v8 = vld [vmem:[%s4105_s0 + $0x2f0] sm:$0xff] }
  0x18   :  { %1947 = vmatprep.subr.mxu1 %v83_v41  ;;  %1913 = vmatpush3.msra.mxu0 %v35_v42  ;;  %v62_v0 = vld [vmem:[%s4105_s0 + $0x100] sm:$0xff]  ;;  %v109_v6 = vld [vmem:[%s4105_s0 + $0x278] sm:$0xff]  ;;  %v156_v9 = vld [vmem:[%s4105_s0 + $0x3f0] sm:$0xff] }
  0x19   :  { %1948 = vmatpush3.msra.mxu1 %v67_v43  ;;  %1914 = vmatprep.subr.mxu0 %v50_v44  ;;  %v14_v2 = vld [vmem:[%s4106_s1] sm:$0xff]  ;;  %v141_v7 = vld [vmem:[%s4105_s0 + $0x378] sm:$0xff]  ;;  %v108_v10 = vld [vmem:[%s4105_s0 + $0x270] sm:$0xff] }
  0x1a   :  { %1949 = vmatprep.subr.mxu1 %v82_v45  ;;  %1915 = vmatpush3.msra.mxu0 %v34_v46  ;;  %v140_v11 = vld [vmem:[%s4105_s0 + $0x370] sm:$0xff]  ;;  %v123_v12 = vld [vmem:[%s4105_s0 + $0x2e8] sm:$0xff]  ;;  %v122_v16 = vld [vmem:[%s4105_s0 + $0x2e0] sm:$0xff] }
  0x1b   :  { %1950 = vmatpush3.msra.mxu1 %v66_v47  ;;  %1916 = vmatprep.subr.mxu0 %v49_v48  ;;  %v155_v13 = vld [vmem:[%s4105_s0 + $0x3e8] sm:$0xff]  ;;  %v154_v17 = vld [vmem:[%s4105_s0 + $0x3e0] sm:$0xff]  ;;  %v121_v20 = vld [vmem:[%s4105_s0 + $0x2d8] sm:$0xff] }
  0x1c   :  { %1951 = vmatprep.subr.mxu1 %v81_v49  ;;  %1917 = vmatpush3.msra.mxu0 %v33_v50  ;;  %v107_v14 = vld [vmem:[%s4105_s0 + $0x268] sm:$0xff]  ;;  %v106_v18 = vld [vmem:[%s4105_s0 + $0x260] sm:$0xff]  ;;  %v153_v21 = vld [vmem:[%s4105_s0 + $0x3d8] sm:$0xff] }
  0x1d   :  { %1952 = vmatpush3.msra.mxu1 %v65_v51  ;;  %1918 = vmatprep.subr.mxu0 %v48_v52  ;;  %v139_v15 = vld [vmem:[%s4105_s0 + $0x368] sm:$0xff]  ;;  %v138_v19 = vld [vmem:[%s4105_s0 + $0x360] sm:$0xff]  ;;  %v105_v22 = vld [vmem:[%s4105_s0 + $0x258] sm:$0xff] }
  0x1e   :  { %1953 = vmatprep.subr.mxu1 %v80_v53  ;;  %1919 = vmatpush3.msra.mxu0 %v32_v54  ;;  %v137_v23 = vld [vmem:[%s4105_s0 + $0x358] sm:$0xff]  ;;  %v120_v24 = vld [vmem:[%s4105_s0 + $0x2d0] sm:$0xff]  ;;  %v119_v28 = vld [vmem:[%s4105_s0 + $0x2c8] sm:$0xff] }
  0x1f   :  { %1954 = vmatpush3.msra.mxu1 %v64_v55  ;;  %1920 = vmatprep.subr.mxu0 %v47_v56  ;;  %v152_v25 = vld [vmem:[%s4105_s0 + $0x3d0] sm:$0xff]  ;;  %v151_v29 = vld [vmem:[%s4105_s0 + $0x3c8] sm:$0xff]  ;;  %v118_v32 = vld [vmem:[%s4105_s0 + $0x2c0] sm:$0xff] }
  0x20   :  { %1955 = vmatprep.subr.mxu1 %v79_v57  ;;  %1921 = vmatpush3.msra.mxu0 %v31_v58  ;;  %v104_v26 = vld [vmem:[%s4105_s0 + $0x250] sm:$0xff]  ;;  %v103_v30 = vld [vmem:[%s4105_s0 + $0x248] sm:$0xff]  ;;  %v150_v33 = vld [vmem:[%s4105_s0 + $0x3c0] sm:$0xff] }
  0x21   :  { %1956 = vmatpush3.msra.mxu1 %v63_v59  ;;  %1922 = vmatprep.subr.mxu0 %v46_v60  ;;  %v136_v27 = vld [vmem:[%s4105_s0 + $0x350] sm:$0xff]  ;;  %v135_v31 = vld [vmem:[%s4105_s0 + $0x348] sm:$0xff]  ;;  %v102_v34 = vld [vmem:[%s4105_s0 + $0x240] sm:$0xff] }
  0x22   :  { %1957 = vmatprep.subr.mxu1 %v78_v61  ;;  %1923 = vmatpush3.msra.mxu0 %v30_v62  ;;  %v134_v35 = vld [vmem:[%s4105_s0 + $0x340] sm:$0xff]  ;;  %v117_v36 = vld [vmem:[%s4105_s0 + $0x2b8] sm:$0xff]  ;;  %v116_v40 = vld [vmem:[%s4105_s0 + $0x2b0] sm:$0xff] }
  0x23   :  { %334 = vmatprep.mubr.f32.mxu0 %v15_v63  ;;  %1958 = vmatpush3.msra.mxu1 %v62_v0  ;;  %v149_v37 = vld [vmem:[%s4105_s0 + $0x3b8] sm:$0xff]  ;;  %v148_v41 = vld [vmem:[%s4105_s0 + $0x3b0] sm:$0xff]  ;;  %v115_v44 = vld [vmem:[%s4105_s0 + $0x2a8] sm:$0xff] }
  0x24   :  { %404 = vmatprep.mubr.f32.mxu1 %v17_v1  ;;  %335 = vmatmul.mubr.f32.vlgmr.msra.gmra.mxu0 %v14_v2  ;;  %v101_v38 = vld [vmem:[%s4105_s0 + $0x238] sm:$0xff]  ;;  %v100_v42 = vld [vmem:[%s4105_s0 + $0x230] sm:$0xff]  ;;  %v147_v45 = vld [vmem:[%s4105_s0 + $0x3a8] sm:$0xff] }
  0x25   :  { %405 = vmatmul.mubr.f32.vlgmr.msra.gmra.mxu1 %v16_v3  ;;  %1962 = vmatprep.subr.mxu0 %v125_v4  ;;  %v133_v39 = vld [vmem:[%s4105_s0 + $0x338] sm:$0xff]  ;;  %v132_v43 = vld [vmem:[%s4105_s0 + $0x330] sm:$0xff]  ;;  %v99_v46 = vld [vmem:[%s4105_s0 + $0x228] sm:$0xff] }
  0x26   :  { %1997 = vmatprep.subr.mxu1 %v157_v5  ;;  %1963 = vmatpush3.msra.mxu0 %v109_v6  ;;  %v131_v47 = vld [vmem:[%s4105_s0 + $0x328] sm:$0xff]  ;;  %v114_v48 = vld [vmem:[%s4105_s0 + $0x2a0] sm:$0xff]  ;;  %v113_v52 = vld [vmem:[%s4105_s0 + $0x298] sm:$0xff] }
  0x27   :  { %1998 = vmatpush3.msra.mxu1 %v141_v7  ;;  %1964 = vmatprep.subr.mxu0 %v124_v8  ;;  %v146_v49 = vld [vmem:[%s4105_s0 + $0x3a0] sm:$0xff]  ;;  %v145_v53 = vld [vmem:[%s4105_s0 + $0x398] sm:$0xff]  ;;  %v112_v56 = vld [vmem:[%s4105_s0 + $0x290] sm:$0xff] }
  0x28   :  { %1999 = vmatprep.subr.mxu1 %v156_v9  ;;  %1965 = vmatpush3.msra.mxu0 %v108_v10  ;;  %v98_v50 = vld [vmem:[%s4105_s0 + $0x220] sm:$0xff]  ;;  %v97_v54 = vld [vmem:[%s4105_s0 + $0x218] sm:$0xff]  ;;  %v144_v57 = vld [vmem:[%s4105_s0 + $0x390] sm:$0xff] }
  0x29   :  { %2000 = vmatpush3.msra.mxu1 %v140_v11  ;;  %1966 = vmatprep.subr.mxu0 %v123_v12  ;;  %v130_v51 = vld [vmem:[%s4105_s0 + $0x320] sm:$0xff]  ;;  %v129_v55 = vld [vmem:[%s4105_s0 + $0x318] sm:$0xff]  ;;  %v96_v58 = vld [vmem:[%s4105_s0 + $0x210] sm:$0xff] }
  0x2a   :  { %2001 = vmatprep.subr.mxu1 %v155_v13  ;;  %1967 = vmatpush3.msra.mxu0 %v107_v14  ;;  %v128_v59 = vld [vmem:[%s4105_s0 + $0x310] sm:$0xff]  ;;  %v111_v60 = vld [vmem:[%s4105_s0 + $0x288] sm:$0xff]  ;;  %v110_v0 = vld [vmem:[%s4105_s0 + $0x280] sm:$0xff] }
  0x2b   :  { %2002 = vmatpush3.msra.mxu1 %v139_v15  ;;  %1968 = vmatprep.subr.mxu0 %v122_v16  ;;  %v143_v61 = vld [vmem:[%s4105_s0 + $0x388] sm:$0xff]  ;;  %v142_v1 = vld [vmem:[%s4105_s0 + $0x380] sm:$0xff]  ;;  %v21_v6 = vld [vmem:[%s4106_s1 + $0x38] sm:$0xff] }
  0x2c   :  { %2003 = vmatprep.subr.mxu1 %v154_v17  ;;  %1969 = vmatpush3.msra.mxu0 %v106_v18  ;;  %v95_v62 = vld [vmem:[%s4105_s0 + $0x208] sm:$0xff]  ;;  %v94_v2 = vld [vmem:[%s4105_s0 + $0x200] sm:$0xff]  ;;  %v189_v7 = vld [vmem:[%s4105_s0 + $0x4f8] sm:$0xff] }
  0x2d   :  { %2004 = vmatpush3.msra.mxu1 %v138_v19  ;;  %1970 = vmatprep.subr.mxu0 %v121_v20  ;;  %v127_v63 = vld [vmem:[%s4105_s0 + $0x308] sm:$0xff]  ;;  %v126_v4 = vld [vmem:[%s4105_s0 + $0x300] sm:$0xff]  ;;  %v221_v8 = vld [vmem:[%s4105_s0 + $0x5f8] sm:$0xff] }
  0x2e   :  { %2005 = vmatprep.subr.mxu1 %v153_v21  ;;  %1971 = vmatpush3.msra.mxu0 %v105_v22  ;;  %v19_v3 = vld [vmem:[%s4106_s1 + $0x28] sm:$0xff]  ;;  %v18_v5 = vld [vmem:[%s4106_s1 + $0x20] sm:$0xff]  ;;  %v20_v9 = vld [vmem:[%s4106_s1 + $0x30] sm:$0xff] }
  0x2f   :  { %2006 = vmatpush3.msra.mxu1 %v137_v23  ;;  %1972 = vmatprep.subr.mxu0 %v120_v24  ;;  %v173_v10 = vld [vmem:[%s4105_s0 + $0x478] sm:$0xff]  ;;  %v188_v12 = vld [vmem:[%s4105_s0 + $0x4f0] sm:$0xff]  ;;  %v187_v16 = vld [vmem:[%s4105_s0 + $0x4e8] sm:$0xff] }
  0x30   :  { %2007 = vmatprep.subr.mxu1 %v152_v25  ;;  %1973 = vmatpush3.msra.mxu0 %v104_v26  ;;  %v205_v11 = vld [vmem:[%s4105_s0 + $0x578] sm:$0xff]  ;;  %v220_v13 = vld [vmem:[%s4105_s0 + $0x5f0] sm:$0xff]  ;;  %v219_v17 = vld [vmem:[%s4105_s0 + $0x5e8] sm:$0xff] }
  0x31   :  { %2008 = vmatpush3.msra.mxu1 %v136_v27  ;;  %1974 = vmatprep.subr.mxu0 %v119_v28  ;;  %v172_v14 = vld [vmem:[%s4105_s0 + $0x470] sm:$0xff]  ;;  %v171_v18 = vld [vmem:[%s4105_s0 + $0x468] sm:$0xff]  ;;  %v186_v20 = vld [vmem:[%s4105_s0 + $0x4e0] sm:$0xff] }
  0x32   :  { %2009 = vmatprep.subr.mxu1 %v151_v29  ;;  %1975 = vmatpush3.msra.mxu0 %v103_v30  ;;  %v204_v15 = vld [vmem:[%s4105_s0 + $0x570] sm:$0xff]  ;;  %v203_v19 = vld [vmem:[%s4105_s0 + $0x568] sm:$0xff]  ;;  %v218_v21 = vld [vmem:[%s4105_s0 + $0x5e0] sm:$0xff] }
  0x33   :  { %2010 = vmatpush3.msra.mxu1 %v135_v31  ;;  %1976 = vmatprep.subr.mxu0 %v118_v32  ;;  %v170_v22 = vld [vmem:[%s4105_s0 + $0x460] sm:$0xff]  ;;  %v185_v24 = vld [vmem:[%s4105_s0 + $0x4d8] sm:$0xff]  ;;  %v184_v28 = vld [vmem:[%s4105_s0 + $0x4d0] sm:$0xff] }
  0x34   :  { %2011 = vmatprep.subr.mxu1 %v150_v33  ;;  %1977 = vmatpush3.msra.mxu0 %v102_v34  ;;  %v202_v23 = vld [vmem:[%s4105_s0 + $0x560] sm:$0xff]  ;;  %v217_v25 = vld [vmem:[%s4105_s0 + $0x5d8] sm:$0xff]  ;;  %v216_v29 = vld [vmem:[%s4105_s0 + $0x5d0] sm:$0xff] }
  0x35   :  { %2012 = vmatpush3.msra.mxu1 %v134_v35  ;;  %1978 = vmatprep.subr.mxu0 %v117_v36  ;;  %v169_v26 = vld [vmem:[%s4105_s0 + $0x458] sm:$0xff]  ;;  %v168_v30 = vld [vmem:[%s4105_s0 + $0x450] sm:$0xff]  ;;  %v183_v32 = vld [vmem:[%s4105_s0 + $0x4c8] sm:$0xff] }
  0x36   :  { %2013 = vmatprep.subr.mxu1 %v149_v37  ;;  %1979 = vmatpush3.msra.mxu0 %v101_v38  ;;  %v201_v27 = vld [vmem:[%s4105_s0 + $0x558] sm:$0xff]  ;;  %v200_v31 = vld [vmem:[%s4105_s0 + $0x550] sm:$0xff]  ;;  %v215_v33 = vld [vmem:[%s4105_s0 + $0x5c8] sm:$0xff] }
  0x37   :  { %2014 = vmatpush3.msra.mxu1 %v133_v39  ;;  %1980 = vmatprep.subr.mxu0 %v116_v40  ;;  %v167_v34 = vld [vmem:[%s4105_s0 + $0x448] sm:$0xff]  ;;  %v182_v36 = vld [vmem:[%s4105_s0 + $0x4c0] sm:$0xff]  ;;  %v181_v40 = vld [vmem:[%s4105_s0 + $0x4b8] sm:$0xff] }
  0x38   :  { %2015 = vmatprep.subr.mxu1 %v148_v41  ;;  %1981 = vmatpush3.msra.mxu0 %v100_v42  ;;  %v199_v35 = vld [vmem:[%s4105_s0 + $0x548] sm:$0xff]  ;;  %v214_v37 = vld [vmem:[%s4105_s0 + $0x5c0] sm:$0xff]  ;;  %v213_v41 = vld [vmem:[%s4105_s0 + $0x5b8] sm:$0xff] }
  0x39   :  { %2016 = vmatpush3.msra.mxu1 %v132_v43  ;;  %1982 = vmatprep.subr.mxu0 %v115_v44  ;;  %v166_v38 = vld [vmem:[%s4105_s0 + $0x440] sm:$0xff]  ;;  %v165_v42 = vld [vmem:[%s4105_s0 + $0x438] sm:$0xff]  ;;  %v180_v44 = vld [vmem:[%s4105_s0 + $0x4b0] sm:$0xff] }
  0x3a   :  { %2017 = vmatprep.subr.mxu1 %v147_v45  ;;  %1983 = vmatpush3.msra.mxu0 %v99_v46  ;;  %v198_v39 = vld [vmem:[%s4105_s0 + $0x540] sm:$0xff]  ;;  %v197_v43 = vld [vmem:[%s4105_s0 + $0x538] sm:$0xff]  ;;  %v212_v45 = vld [vmem:[%s4105_s0 + $0x5b0] sm:$0xff] }
  0x3b   :  { %2018 = vmatpush3.msra.mxu1 %v131_v47  ;;  %1984 = vmatprep.subr.mxu0 %v114_v48  ;;  %v164_v46 = vld [vmem:[%s4105_s0 + $0x430] sm:$0xff]  ;;  %v179_v48 = vld [vmem:[%s4105_s0 + $0x4a8] sm:$0xff] }
  0x3c   :  { %2019 = vmatprep.subr.mxu1 %v146_v49  ;;  %1985 = vmatpush3.msra.mxu0 %v98_v50  ;;  %v196_v47 = vld [vmem:[%s4105_s0 + $0x530] sm:$0xff]  ;;  %v211_v49 = vld [vmem:[%s4105_s0 + $0x5a8] sm:$0xff] }
  0x3d   :  { %2020 = vmatpush3.msra.mxu1 %v130_v51  ;;  %1986 = vmatprep.subr.mxu0 %v113_v52  ;;  %v163_v50 = vld [vmem:[%s4105_s0 + $0x428] sm:$0xff]  ;;  %v178_v52 = vld [vmem:[%s4105_s0 + $0x4a0] sm:$0xff] }
  0x3e   :  { %2021 = vmatprep.subr.mxu1 %v145_v53  ;;  %1987 = vmatpush3.msra.mxu0 %v97_v54  ;;  %v195_v51 = vld [vmem:[%s4105_s0 + $0x528] sm:$0xff]  ;;  %v210_v53 = vld [vmem:[%s4105_s0 + $0x5a0] sm:$0xff] }
  0x3f   :  { %2022 = vmatpush3.msra.mxu1 %v129_v55  ;;  %1988 = vmatprep.subr.mxu0 %v112_v56  ;;  %v162_v54 = vld [vmem:[%s4105_s0 + $0x420] sm:$0xff]  ;;  %v177_v56 = vld [vmem:[%s4105_s0 + $0x498] sm:$0xff] }
  0x40   :  { %2023 = vmatprep.subr.mxu1 %v144_v57  ;;  %1989 = vmatpush3.msra.mxu0 %v96_v58  ;;  %v194_v55 = vld [vmem:[%s4105_s0 + $0x520] sm:$0xff]  ;;  %v209_v57 = vld [vmem:[%s4105_s0 + $0x598] sm:$0xff] }
  0x41   :  { %2024 = vmatpush3.msra.mxu1 %v128_v59  ;;  %1990 = vmatprep.subr.mxu0 %v111_v60  ;;  %v161_v58 = vld [vmem:[%s4105_s0 + $0x418] sm:$0xff]  ;;  %v176_v60 = vld [vmem:[%s4105_s0 + $0x490] sm:$0xff] }
  0x42   :  { %2025 = vmatprep.subr.mxu1 %v143_v61  ;;  %1991 = vmatpush3.msra.mxu0 %v95_v62  ;;  %v193_v59 = vld [vmem:[%s4105_s0 + $0x518] sm:$0xff]  ;;  %v208_v61 = vld [vmem:[%s4105_s0 + $0x590] sm:$0xff] }
  0x43   :  { %2026 = vmatpush3.msra.mxu1 %v127_v63  ;;  %1992 = vmatprep.subr.mxu0 %v110_v0  ;;  %v160_v62 = vld [vmem:[%s4105_s0 + $0x410] sm:$0xff]  ;;  %v175_v0 = vld [vmem:[%s4105_s0 + $0x488] sm:$0xff] }
  0x44   :  { %2027 = vmatprep.subr.mxu1 %v142_v1  ;;  %1993 = vmatpush3.msra.mxu0 %v94_v2  ;;  %v192_v63 = vld [vmem:[%s4105_s0 + $0x510] sm:$0xff]  ;;  %v207_v1 = vld [vmem:[%s4105_s0 + $0x588] sm:$0xff] }
  0x45   :  { %474 = vmatprep.mubr.f32.mxu0 %v19_v3  ;;  %2028 = vmatpush3.msra.mxu1 %v126_v4  ;;  %v159_v2 = vld [vmem:[%s4105_s0 + $0x408] sm:$0xff]  ;;  %v174_v4 = vld [vmem:[%s4105_s0 + $0x480] sm:$0xff] }
  0x46   :  { %475 = vmatmul.mubr.f32.vlgmr.msra.gmra.mxu0 %v18_v5  ;;  %544 = vmatprep.mubr.f32.mxu1 %v21_v6  ;;  %v191_v3 = vld [vmem:[%s4105_s0 + $0x508] sm:$0xff]  ;;  %v206_v5 = vld [vmem:[%s4105_s0 + $0x580] sm:$0xff] }
  0x47   :  { %2032 = vmatprep.subr.mxu0 %v189_v7  ;;  %2067 = vmatprep.subr.mxu1 %v221_v8  ;;  %v158_v6 = vld [vmem:[%s4105_s0 + $0x400] sm:$0xff]  ;;  %v23_v7 = vld [vmem:[%s4106_s1 + $0x48] sm:$0xff] }
  0x48   :  { %545 = vmatmul.mubr.f32.vlgmr.msra.gmra.mxu1 %v20_v9  ;;  %2033 = vmatpush3.msra.mxu0 %v173_v10  ;;  %v190_v8 = vld [vmem:[%s4105_s0 + $0x500] sm:$0xff]  ;;  %v25_v10 = vld [vmem:[%s4106_s1 + $0x58] sm:$0xff] }
  0x49   :  { %2068 = vmatpush3.msra.mxu1 %v205_v11  ;;  %2034 = vmatprep.subr.mxu0 %v188_v12  ;;  %v22_v9 = vld [vmem:[%s4106_s1 + $0x40] sm:$0xff]  ;;  %v253_v11 = vld [vmem:[%s4105_s0 + $0x6f8] sm:$0xff]  ;;  %v24_v12 = vld [vmem:[%s4106_s1 + $0x50] sm:$0xff] }
  0x4a   :  { %2069 = vmatprep.subr.mxu1 %v220_v13  ;;  %2035 = vmatpush3.msra.mxu0 %v172_v14  ;;  %v237_v13 = vld [vmem:[%s4105_s0 + $0x678] sm:$0xff] }
  0x4b   :  { %2070 = vmatpush3.msra.mxu1 %v204_v15  ;;  %2036 = vmatprep.subr.mxu0 %v187_v16  ;;  %v269_v14 = vld [vmem:[%s4105_s0 + $0x778] sm:$0xff]  ;;  %v252_v15 = vld [vmem:[%s4105_s0 + $0x6f0] sm:$0xff]  ;;  %v2504_v16 = vmov 0.0  }
  0x4c   :  { %2071 = vmatprep.subr.mxu1 %v219_v17  ;;  %2037 = vmatpush3.msra.mxu0 %v171_v18  ;;  %v236_v17 = vld [vmem:[%s4105_s0 + $0x670] sm:$0xff] }
  0x4d   :  { %2072 = vmatpush3.msra.mxu1 %v203_v19  ;;  %2038 = vmatprep.subr.mxu0 %v186_v20  ;;  %v268_v18 = vld [vmem:[%s4105_s0 + $0x770] sm:$0xff]  ;;  %v251_v19 = vld [vmem:[%s4105_s0 + $0x6e8] sm:$0xff] }
  0x4e   :  { %2073 = vmatprep.subr.mxu1 %v218_v21  ;;  %2039 = vmatpush3.msra.mxu0 %v170_v22  ;;  %v235_v20 = vld [vmem:[%s4105_s0 + $0x668] sm:$0xff]  ;;  %v250_v22 = vld [vmem:[%s4105_s0 + $0x6e0] sm:$0xff] }
  0x4f   :  { %2074 = vmatpush3.msra.mxu1 %v202_v23  ;;  %2040 = vmatprep.subr.mxu0 %v185_v24  ;;  %v267_v21 = vld [vmem:[%s4105_s0 + $0x768] sm:$0xff]  ;;  %v234_v23 = vld [vmem:[%s4105_s0 + $0x660] sm:$0xff] }
  0x50   :  { %2075 = vmatprep.subr.mxu1 %v217_v25  ;;  %2041 = vmatpush3.msra.mxu0 %v169_v26  ;;  %v266_v24 = vld [vmem:[%s4105_s0 + $0x760] sm:$0xff]  ;;  %v249_v25 = vld [vmem:[%s4105_s0 + $0x6d8] sm:$0xff] }
  0x51   :  { %2076 = vmatpush3.msra.mxu1 %v201_v27  ;;  %2042 = vmatprep.subr.mxu0 %v184_v28  ;;  %v233_v26 = vld [vmem:[%s4105_s0 + $0x658] sm:$0xff]  ;;  %v248_v28 = vld [vmem:[%s4105_s0 + $0x6d0] sm:$0xff] }
  0x52   :  { %2077 = vmatprep.subr.mxu1 %v216_v29  ;;  %2043 = vmatpush3.msra.mxu0 %v168_v30  ;;  %v265_v27 = vld [vmem:[%s4105_s0 + $0x758] sm:$0xff]  ;;  %v232_v29 = vld [vmem:[%s4105_s0 + $0x650] sm:$0xff] }
  0x53   :  { %2078 = vmatpush3.msra.mxu1 %v200_v31  ;;  %2044 = vmatprep.subr.mxu0 %v183_v32  ;;  %v264_v30 = vld [vmem:[%s4105_s0 + $0x750] sm:$0xff]  ;;  %v247_v31 = vld [vmem:[%s4105_s0 + $0x6c8] sm:$0xff] }
  0x54   :  { %2079 = vmatprep.subr.mxu1 %v215_v33  ;;  %2045 = vmatpush3.msra.mxu0 %v167_v34  ;;  %v231_v32 = vld [vmem:[%s4105_s0 + $0x648] sm:$0xff]  ;;  %v246_v34 = vld [vmem:[%s4105_s0 + $0x6c0] sm:$0xff] }
  0x55   :  { %2080 = vmatpush3.msra.mxu1 %v199_v35  ;;  %2046 = vmatprep.subr.mxu0 %v182_v36  ;;  %v263_v33 = vld [vmem:[%s4105_s0 + $0x748] sm:$0xff]  ;;  %v230_v35 = vld [vmem:[%s4105_s0 + $0x640] sm:$0xff] }
  0x56   :  { %2081 = vmatprep.subr.mxu1 %v214_v37  ;;  %2047 = vmatpush3.msra.mxu0 %v166_v38  ;;  %v262_v36 = vld [vmem:[%s4105_s0 + $0x740] sm:$0xff]  ;;  %v245_v37 = vld [vmem:[%s4105_s0 + $0x6b8] sm:$0xff] }
  0x57   :  { %2082 = vmatpush3.msra.mxu1 %v198_v39  ;;  %2048 = vmatprep.subr.mxu0 %v181_v40  ;;  %v229_v38 = vld [vmem:[%s4105_s0 + $0x638] sm:$0xff]  ;;  %v244_v40 = vld [vmem:[%s4105_s0 + $0x6b0] sm:$0xff] }
  0x58   :  { %2083 = vmatprep.subr.mxu1 %v213_v41  ;;  %2049 = vmatpush3.msra.mxu0 %v165_v42  ;;  %v261_v39 = vld [vmem:[%s4105_s0 + $0x738] sm:$0xff]  ;;  %v228_v41 = vld [vmem:[%s4105_s0 + $0x630] sm:$0xff] }
  0x59   :  { %2084 = vmatpush3.msra.mxu1 %v197_v43  ;;  %2050 = vmatprep.subr.mxu0 %v180_v44  ;;  %v260_v42 = vld [vmem:[%s4105_s0 + $0x730] sm:$0xff]  ;;  %v243_v43 = vld [vmem:[%s4105_s0 + $0x6a8] sm:$0xff] }
  0x5a   :  { %2085 = vmatprep.subr.mxu1 %v212_v45  ;;  %2051 = vmatpush3.msra.mxu0 %v164_v46  ;;  %v227_v44 = vld [vmem:[%s4105_s0 + $0x628] sm:$0xff]  ;;  %v242_v46 = vld [vmem:[%s4105_s0 + $0x6a0] sm:$0xff] }
  0x5b   :  { %2086 = vmatpush3.msra.mxu1 %v196_v47  ;;  %2052 = vmatprep.subr.mxu0 %v179_v48  ;;  %v259_v45 = vld [vmem:[%s4105_s0 + $0x728] sm:$0xff]  ;;  %v226_v47 = vld [vmem:[%s4105_s0 + $0x620] sm:$0xff] }
  0x5c   :  { %2087 = vmatprep.subr.mxu1 %v211_v49  ;;  %2053 = vmatpush3.msra.mxu0 %v163_v50  ;;  %v258_v48 = vld [vmem:[%s4105_s0 + $0x720] sm:$0xff]  ;;  %v241_v49 = vld [vmem:[%s4105_s0 + $0x698] sm:$0xff] }
  0x5d   :  { %2088 = vmatpush3.msra.mxu1 %v195_v51  ;;  %2054 = vmatprep.subr.mxu0 %v178_v52  ;;  %v225_v50 = vld [vmem:[%s4105_s0 + $0x618] sm:$0xff]  ;;  %v240_v52 = vld [vmem:[%s4105_s0 + $0x690] sm:$0xff] }
  0x5e   :  { %2089 = vmatprep.subr.mxu1 %v210_v53  ;;  %2055 = vmatpush3.msra.mxu0 %v162_v54  ;;  %v257_v51 = vld [vmem:[%s4105_s0 + $0x718] sm:$0xff]  ;;  %v224_v53 = vld [vmem:[%s4105_s0 + $0x610] sm:$0xff] }
  0x5f   :  { %2090 = vmatpush3.msra.mxu1 %v194_v55  ;;  %2056 = vmatprep.subr.mxu0 %v177_v56  ;;  %v256_v54 = vld [vmem:[%s4105_s0 + $0x710] sm:$0xff]  ;;  %v239_v55 = vld [vmem:[%s4105_s0 + $0x688] sm:$0xff] }
  0x60   :  { %2091 = vmatprep.subr.mxu1 %v209_v57  ;;  %2057 = vmatpush3.msra.mxu0 %v161_v58  ;;  %v223_v56 = vld [vmem:[%s4105_s0 + $0x608] sm:$0xff]  ;;  %v238_v58 = vld [vmem:[%s4105_s0 + $0x680] sm:$0xff] }
  0x61   :  { %2092 = vmatpush3.msra.mxu1 %v193_v59  ;;  %2058 = vmatprep.subr.mxu0 %v176_v60  ;;  %v255_v57 = vld [vmem:[%s4105_s0 + $0x708] sm:$0xff]  ;;  %v222_v59 = vld [vmem:[%s4105_s0 + $0x600] sm:$0xff] }
  0x62   :  { %2093 = vmatprep.subr.mxu1 %v208_v61  ;;  %2059 = vmatpush3.msra.mxu0 %v160_v62  ;;  %v27_v60 = vld [vmem:[%s4106_s1 + $0x68] sm:$0xff]  ;;  %v254_v61 = vld [vmem:[%s4105_s0 + $0x700] sm:$0xff] }
  0x63   :  { %2094 = vmatpush3.msra.mxu1 %v192_v63  ;;  %2060 = vmatprep.subr.mxu0 %v175_v0  ;;  %v26_v62 = vld [vmem:[%s4106_s1 + $0x60] sm:$0xff]  ;;  %v1683_v63 = vld [vmem:[%s4105_s0 + $0x878] sm:$0xff] }
  0x64   :  { %2095 = vmatprep.subr.mxu1 %v207_v1  ;;  %2061 = vmatpush3.msra.mxu0 %v159_v2  ;;  %v1715_v0 = vld [vmem:[%s4105_s0 + $0x978] sm:$0xff]  ;;  %v28_v1 = vld [vmem:[%s4106_s1 + $0x70] sm:$0xff] }
  0x65   :  { %2096 = vmatpush3.msra.mxu1 %v191_v3  ;;  %2062 = vmatprep.subr.mxu0 %v174_v4  ;;  %v1667_v2 = vld [vmem:[%s4105_s0 + $0x7f8] sm:$0xff]  ;;  %v1682_v4 = vld [vmem:[%s4105_s0 + $0x870] sm:$0xff] }
  0x66   :  { %2097 = vmatprep.subr.mxu1 %v206_v5  ;;  %2063 = vmatpush3.msra.mxu0 %v158_v6  ;;  %v1699_v3 = vld [vmem:[%s4105_s0 + $0x8f8] sm:$0xff]  ;;  %v1714_v5 = vld [vmem:[%s4105_s0 + $0x970] sm:$0xff] }
  0x67   :  { %614 = vmatprep.mubr.f32.mxu0 %v23_v7  ;;  %2098 = vmatpush3.msra.mxu1 %v190_v8  ;;  %v1666_v6 = vld [vmem:[%s4105_s0 + $0x7f0] sm:$0xff]  ;;  %v1681_v8 = vld [vmem:[%s4105_s0 + $0x868] sm:$0xff] }
  0x68   :  { %615 = vmatmul.mubr.f32.vlgmr.msra.gmra.mxu0 %v22_v9  ;;  %684 = vmatprep.mubr.f32.mxu1 %v25_v10  ;;  %v1698_v7 = vld [vmem:[%s4105_s0 + $0x8f0] sm:$0xff]  ;;  %v1713_v9 = vld [vmem:[%s4105_s0 + $0x968] sm:$0xff] }
  0x69   :  { %2102 = vmatprep.subr.mxu0 %v253_v11  ;;  %2416 = vmatprep.subr.mxu1 %v2504_v16  ;;  %v1665_v10 = vld [vmem:[%s4105_s0 + $0x7e8] sm:$0xff] }
  0x6a   :  { %685 = vmatmul.mubr.f32.vlgmr.msra.gmra.mxu1 %v24_v12  ;;  %2103 = vmatpush3.msra.mxu0 %v237_v13  ;;  %v1697_v11 = vld [vmem:[%s4105_s0 + $0x8e8] sm:$0xff]  ;;  %v1680_v12 = vld [vmem:[%s4105_s0 + $0x860] sm:$0xff] }
  0x6b   :  { %2417 = vmatpush3.msra.mxu1 %v269_v14  ;;  %2104 = vmatprep.subr.mxu0 %v252_v15  ;;  %v1712_v13 = vld [vmem:[%s4105_s0 + $0x960] sm:$0xff] }
  0x6c   :  { %2418 = vmatprep.subr.mxu1 %v2504_v16  ;;  %2105 = vmatpush3.msra.mxu0 %v236_v17  ;;  %v1664_v14 = vld [vmem:[%s4105_s0 + $0x7e0] sm:$0xff]  ;;  %v1679_v17 = vld [vmem:[%s4105_s0 + $0x858] sm:$0xff] }
  0x6d   :  { %2419 = vmatpush3.msra.mxu1 %v268_v18  ;;  %2106 = vmatprep.subr.mxu0 %v251_v19  ;;  %v1696_v15 = vld [vmem:[%s4105_s0 + $0x8e0] sm:$0xff]  ;;  %v1711_v18 = vld [vmem:[%s4105_s0 + $0x958] sm:$0xff] }
  0x6e   :  { %2420 = vmatprep.subr.mxu1 %v2504_v16  ;;  %2107 = vmatpush3.msra.mxu0 %v235_v20  ;;  %v1663_v19 = vld [vmem:[%s4105_s0 + $0x7d8] sm:$0xff] }
  0x6f   :  { %2421 = vmatpush3.msra.mxu1 %v267_v21  ;;  %2108 = vmatprep.subr.mxu0 %v250_v22  ;;  %v1695_v20 = vld [vmem:[%s4105_s0 + $0x8d8] sm:$0xff]  ;;  %v1678_v21 = vld [vmem:[%s4105_s0 + $0x850] sm:$0xff] }
  0x70   :  { %2422 = vmatprep.subr.mxu1 %v2504_v16  ;;  %2109 = vmatpush3.msra.mxu0 %v234_v23  ;;  %v1710_v22 = vld [vmem:[%s4105_s0 + $0x950] sm:$0xff] }
  0x71   :  { %2423 = vmatpush3.msra.mxu1 %v266_v24  ;;  %2110 = vmatprep.subr.mxu0 %v249_v25  ;;  %v1662_v23 = vld [vmem:[%s4105_s0 + $0x7d0] sm:$0xff]  ;;  %v1677_v25 = vld [vmem:[%s4105_s0 + $0x848] sm:$0xff] }
  0x72   :  { %2424 = vmatprep.subr.mxu1 %v2504_v16  ;;  %2111 = vmatpush3.msra.mxu0 %v233_v26  ;;  %v1694_v24 = vld [vmem:[%s4105_s0 + $0x8d0] sm:$0xff]  ;;  %v1709_v26 = vld [vmem:[%s4105_s0 + $0x948] sm:$0xff] }
  0x73   :  { %2425 = vmatpush3.msra.mxu1 %v265_v27  ;;  %2112 = vmatprep.subr.mxu0 %v248_v28  ;;  %v1661_v27 = vld [vmem:[%s4105_s0 + $0x7c8] sm:$0xff] }
  0x74   :  { %2426 = vmatprep.subr.mxu1 %v2504_v16  ;;  %2113 = vmatpush3.msra.mxu0 %v232_v29  ;;  %v1693_v28 = vld [vmem:[%s4105_s0 + $0x8c8] sm:$0xff]  ;;  %v1676_v29 = vld [vmem:[%s4105_s0 + $0x840] sm:$0xff] }
  0x75   :  { %2427 = vmatpush3.msra.mxu1 %v264_v30  ;;  %2114 = vmatprep.subr.mxu0 %v247_v31  ;;  %v1708_v30 = vld [vmem:[%s4105_s0 + $0x940] sm:$0xff] }
  0x76   :  { %2428 = vmatprep.subr.mxu1 %v2504_v16  ;;  %2115 = vmatpush3.msra.mxu0 %v231_v32  ;;  %v1660_v31 = vld [vmem:[%s4105_s0 + $0x7c0] sm:$0xff] }
  0x77   :  { %2429 = vmatpush3.msra.mxu1 %v263_v33  ;;  %2116 = vmatprep.subr.mxu0 %v246_v34  ;;  %v1692_v32 = vld [vmem:[%s4105_s0 + $0x8c0] sm:$0xff]  ;;  %v1675_v33 = vld [vmem:[%s4105_s0 + $0x838] sm:$0xff] }
  0x78   :  { %2430 = vmatprep.subr.mxu1 %v2504_v16  ;;  %2117 = vmatpush3.msra.mxu0 %v230_v35  ;;  %v1707_v34 = vld [vmem:[%s4105_s0 + $0x938] sm:$0xff] }
  0x79   :  { %2431 = vmatpush3.msra.mxu1 %v262_v36  ;;  %2118 = vmatprep.subr.mxu0 %v245_v37  ;;  %v1659_v35 = vld [vmem:[%s4105_s0 + $0x7b8] sm:$0xff]  ;;  %v1674_v37 = vld [vmem:[%s4105_s0 + $0x830] sm:$0xff] }
  0x7a   :  { %2432 = vmatprep.subr.mxu1 %v2504_v16  ;;  %2119 = vmatpush3.msra.mxu0 %v229_v38  ;;  %v1691_v36 = vld [vmem:[%s4105_s0 + $0x8b8] sm:$0xff]  ;;  %v1706_v38 = vld [vmem:[%s4105_s0 + $0x930] sm:$0xff] }
  0x7b   :  { %2433 = vmatpush3.msra.mxu1 %v261_v39  ;;  %2120 = vmatprep.subr.mxu0 %v244_v40  ;;  %v1658_v39 = vld [vmem:[%s4105_s0 + $0x7b0] sm:$0xff] }
  0x7c   :  { %2434 = vmatprep.subr.mxu1 %v2504_v16  ;;  %2121 = vmatpush3.msra.mxu0 %v228_v41  ;;  %v1690_v40 = vld [vmem:[%s4105_s0 + $0x8b0] sm:$0xff]  ;;  %v1673_v41 = vld [vmem:[%s4105_s0 + $0x828] sm:$0xff] }
  0x7d   :  { %2435 = vmatpush3.msra.mxu1 %v260_v42  ;;  %2122 = vmatprep.subr.mxu0 %v243_v43  ;;  %v1705_v42 = vld [vmem:[%s4105_s0 + $0x928] sm:$0xff] }
  0x7e   :  { %2436 = vmatprep.subr.mxu1 %v2504_v16  ;;  %2123 = vmatpush3.msra.mxu0 %v227_v44  ;;  %v1657_v43 = vld [vmem:[%s4105_s0 + $0x7a8] sm:$0xff] }
  0x7f   :  { %2437 = vmatpush3.msra.mxu1 %v259_v45  ;;  %2124 = vmatprep.subr.mxu0 %v242_v46  ;;  %v1689_v44 = vld [vmem:[%s4105_s0 + $0x8a8] sm:$0xff]  ;;  %v1672_v45 = vld [vmem:[%s4105_s0 + $0x820] sm:$0xff] }
  0x80   :  { %2438 = vmatprep.subr.mxu1 %v2504_v16  ;;  %2125 = vmatpush3.msra.mxu0 %v226_v47  ;;  %v1704_v46 = vld [vmem:[%s4105_s0 + $0x920] sm:$0xff] }
  0x81   :  { %2439 = vmatpush3.msra.mxu1 %v258_v48  ;;  %2126 = vmatprep.subr.mxu0 %v241_v49  ;;  %v1656_v47 = vld [vmem:[%s4105_s0 + $0x7a0] sm:$0xff]  ;;  %v1671_v49 = vld [vmem:[%s4105_s0 + $0x818] sm:$0xff] }
  0x82   :  { %2440 = vmatprep.subr.mxu1 %v2504_v16  ;;  %2127 = vmatpush3.msra.mxu0 %v225_v50  ;;  %v1688_v48 = vld [vmem:[%s4105_s0 + $0x8a0] sm:$0xff]  ;;  %v1703_v50 = vld [vmem:[%s4105_s0 + $0x918] sm:$0xff] }
  0x83   :  { %2441 = vmatpush3.msra.mxu1 %v257_v51  ;;  %2128 = vmatprep.subr.mxu0 %v240_v52  ;;  %v1655_v51 = vld [vmem:[%s4105_s0 + $0x798] sm:$0xff] }
  0x84   :  { %2442 = vmatprep.subr.mxu1 %v2504_v16  ;;  %2129 = vmatpush3.msra.mxu0 %v224_v53  ;;  %v1687_v52 = vld [vmem:[%s4105_s0 + $0x898] sm:$0xff]  ;;  %v1670_v53 = vld [vmem:[%s4105_s0 + $0x810] sm:$0xff] }
  0x85   :  { %2443 = vmatpush3.msra.mxu1 %v256_v54  ;;  %2130 = vmatprep.subr.mxu0 %v239_v55  ;;  %v1702_v54 = vld [vmem:[%s4105_s0 + $0x910] sm:$0xff] }
  0x86   :  { %2444 = vmatprep.subr.mxu1 %v2504_v16  ;;  %2131 = vmatpush3.msra.mxu0 %v223_v56  ;;  %v1654_v55 = vld [vmem:[%s4105_s0 + $0x790] sm:$0xff] }
  0x87   :  { %2445 = vmatpush3.msra.mxu1 %v255_v57  ;;  %2132 = vmatprep.subr.mxu0 %v238_v58  ;;  %v1686_v56 = vld [vmem:[%s4105_s0 + $0x890] sm:$0xff]  ;;  %v1669_v57 = vld [vmem:[%s4105_s0 + $0x808] sm:$0xff] }
  0x88   :  { %2446 = vmatprep.subr.mxu1 %v2504_v16  ;;  %2133 = vmatpush3.msra.mxu0 %v222_v59  ;;  %v1701_v58 = vld [vmem:[%s4105_s0 + $0x908] sm:$0xff] }
  0x89   :  { %754 = vmatprep.mubr.f32.mxu0 %v27_v60  ;;  %2447 = vmatpush3.msra.mxu1 %v254_v61  ;;  %v1653_v59 = vld [vmem:[%s4105_s0 + $0x788] sm:$0xff]  ;;  %v1668_v61 = vld [vmem:[%s4105_s0 + $0x800] sm:$0xff] }
  0x8a   :  { %755 = vmatmul.mubr.f32.vlgmr.msra.gmra.mxu0 %v26_v62  ;;  %2448 = vmatprep.mubr.msk.f32.mxu1 %vm2505_vm0, %v2504_v16  ;;  %v1685_v60 = vld [vmem:[%s4105_s0 + $0x888] sm:$0xff]  ;;  %v1700_v62 = vld [vmem:[%s4105_s0 + $0x900] sm:$0xff] }
  0x8b   :  { %2154 = vmatprep.subr.mxu0 %v1683_v63  ;;  %2189 = vmatprep.subr.mxu1 %v1715_v0  ;;  %v1652_v63 = vld [vmem:[%s4105_s0 + $0x780] sm:$0xff] }
  0x8c   :  { %2449 = vmatmul.mubr.f32.vlgmr.msra.gmra.mxu1 %v28_v1  ;;  %2155 = vmatpush3.msra.mxu0 %v1667_v2  ;;  %v1684_v0 = vld [vmem:[%s4105_s0 + $0x880] sm:$0xff]  ;;  %v2489_v1 = vld [vmem:[%s4106_s1 + $0x8] sm:$0xff]  ;;  %v1747_v2 = vld [vmem:[%s4105_s0 + $0xa78] sm:$0xff] }
  0x8d   :  { %2190 = vmatpush3.msra.mxu1 %v1699_v3  ;;  %2156 = vmatprep.subr.mxu0 %v1682_v4  ;;  %v1779_v3 = vld [vmem:[%s4105_s0 + $0xb78] sm:$0xff] }
  0x8e   :  { %2191 = vmatprep.subr.mxu1 %v1714_v5  ;;  %2157 = vmatpush3.msra.mxu0 %v1666_v6  ;;  %v2490_v4 = vld [vmem:[%s4106_s1 + $0x18] sm:$0xff] }
  0x8f   :  { %2192 = vmatpush3.msra.mxu1 %v1698_v7  ;;  %2158 = vmatprep.subr.mxu0 %v1681_v8  ;;  %v1731_v5 = vld [vmem:[%s4105_s0 + $0x9f8] sm:$0xff]  ;;  %v2491_v7 = vld [vmem:[%s4106_s1] sm:$0xff]  ;;  %v2492_v8 = vld [vmem:[%s4106_s1 + $0x10] sm:$0xff] }
  0x90   :  { %2193 = vmatprep.subr.mxu1 %v1713_v9  ;;  %2159 = vmatpush3.msra.mxu0 %v1665_v10  ;;  %v1763_v6 = vld [vmem:[%s4105_s0 + $0xaf8] sm:$0xff]  ;;  %v1746_v9 = vld [vmem:[%s4105_s0 + $0xa70] sm:$0xff] }
  0x91   :  { %2194 = vmatpush3.msra.mxu1 %v1697_v11  ;;  %2160 = vmatprep.subr.mxu0 %v1680_v12  ;;  %v1778_v10 = vld [vmem:[%s4105_s0 + $0xb70] sm:$0xff] }
  0x92   :  { %2195 = vmatprep.subr.mxu1 %v1712_v13  ;;  %2161 = vmatpush3.msra.mxu0 %v1664_v14  ;;  %v1730_v11 = vld [vmem:[%s4105_s0 + $0x9f0] sm:$0xff]  ;;  %v1745_v13 = vld [vmem:[%s4105_s0 + $0xa68] sm:$0xff] }
  0x93   :  { %2196 = vmatpush3.msra.mxu1 %v1696_v15  ;;  %2162 = vmatprep.subr.mxu0 %v1679_v17  ;;  %v1762_v12 = vld [vmem:[%s4105_s0 + $0xaf0] sm:$0xff]  ;;  %v1777_v14 = vld [vmem:[%s4105_s0 + $0xb68] sm:$0xff] }
  0x94   :  { %2197 = vmatprep.subr.mxu1 %v1711_v18  ;;  %2163 = vmatpush3.msra.mxu0 %v1663_v19  ;;  %v1729_v15 = vld [vmem:[%s4105_s0 + $0x9e8] sm:$0xff]  ;;  %v1744_v18 = vld [vmem:[%s4105_s0 + $0xa60] sm:$0xff] }
  0x95   :  { %2198 = vmatpush3.msra.mxu1 %v1695_v20  ;;  %2164 = vmatprep.subr.mxu0 %v1678_v21  ;;  %v1761_v17 = vld [vmem:[%s4105_s0 + $0xae8] sm:$0xff]  ;;  %v1776_v19 = vld [vmem:[%s4105_s0 + $0xb60] sm:$0xff] }
  0x96   :  { %2199 = vmatprep.subr.mxu1 %v1710_v22  ;;  %2165 = vmatpush3.msra.mxu0 %v1662_v23  ;;  %v1728_v20 = vld [vmem:[%s4105_s0 + $0x9e0] sm:$0xff]  ;;  %v1743_v22 = vld [vmem:[%s4105_s0 + $0xa58] sm:$0xff] }
  0x97   :  { %2200 = vmatpush3.msra.mxu1 %v1694_v24  ;;  %2166 = vmatprep.subr.mxu0 %v1677_v25  ;;  %v1760_v21 = vld [vmem:[%s4105_s0 + $0xae0] sm:$0xff]  ;;  %v1775_v23 = vld [vmem:[%s4105_s0 + $0xb58] sm:$0xff] }
  0x98   :  { %2201 = vmatprep.subr.mxu1 %v1709_v26  ;;  %2167 = vmatpush3.msra.mxu0 %v1661_v27  ;;  %v1727_v24 = vld [vmem:[%s4105_s0 + $0x9d8] sm:$0xff]  ;;  %v1742_v26 = vld [vmem:[%s4105_s0 + $0xa50] sm:$0xff] }
  0x99   :  { %2202 = vmatpush3.msra.mxu1 %v1693_v28  ;;  %2168 = vmatprep.subr.mxu0 %v1676_v29  ;;  %v1759_v25 = vld [vmem:[%s4105_s0 + $0xad8] sm:$0xff]  ;;  %v1774_v27 = vld [vmem:[%s4105_s0 + $0xb50] sm:$0xff] }
  0x9a   :  { %2203 = vmatprep.subr.mxu1 %v1708_v30  ;;  %2169 = vmatpush3.msra.mxu0 %v1660_v31  ;;  %v1726_v28 = vld [vmem:[%s4105_s0 + $0x9d0] sm:$0xff]  ;;  %v1741_v30 = vld [vmem:[%s4105_s0 + $0xa48] sm:$0xff] }
  0x9b   :  { %2204 = vmatpush3.msra.mxu1 %v1692_v32  ;;  %2170 = vmatprep.subr.mxu0 %v1675_v33  ;;  %v1758_v29 = vld [vmem:[%s4105_s0 + $0xad0] sm:$0xff]  ;;  %v1773_v31 = vld [vmem:[%s4105_s0 + $0xb48] sm:$0xff] }
  0x9c   :  { %2205 = vmatprep.subr.mxu1 %v1707_v34  ;;  %2171 = vmatpush3.msra.mxu0 %v1659_v35  ;;  %v1725_v32 = vld [vmem:[%s4105_s0 + $0x9c8] sm:$0xff]  ;;  %v1740_v34 = vld [vmem:[%s4105_s0 + $0xa40] sm:$0xff] }
  0x9d   :  { %2206 = vmatpush3.msra.mxu1 %v1691_v36  ;;  %2172 = vmatprep.subr.mxu0 %v1674_v37  ;;  %v1757_v33 = vld [vmem:[%s4105_s0 + $0xac8] sm:$0xff]  ;;  %v1772_v35 = vld [vmem:[%s4105_s0 + $0xb40] sm:$0xff] }
  0x9e   :  { %2207 = vmatprep.subr.mxu1 %v1706_v38  ;;  %2173 = vmatpush3.msra.mxu0 %v1658_v39  ;;  %v1724_v36 = vld [vmem:[%s4105_s0 + $0x9c0] sm:$0xff]  ;;  %v1739_v38 = vld [vmem:[%s4105_s0 + $0xa38] sm:$0xff] }
  0x9f   :  { %2208 = vmatpush3.msra.mxu1 %v1690_v40  ;;  %2174 = vmatprep.subr.mxu0 %v1673_v41  ;;  %v1756_v37 = vld [vmem:[%s4105_s0 + $0xac0] sm:$0xff]  ;;  %v1771_v39 = vld [vmem:[%s4105_s0 + $0xb38] sm:$0xff] }
  0xa0   :  { %2209 = vmatprep.subr.mxu1 %v1705_v42  ;;  %2175 = vmatpush3.msra.mxu0 %v1657_v43  ;;  %v1723_v40 = vld [vmem:[%s4105_s0 + $0x9b8] sm:$0xff]  ;;  %v1738_v42 = vld [vmem:[%s4105_s0 + $0xa30] sm:$0xff] }
  0xa1   :  { %2210 = vmatpush3.msra.mxu1 %v1689_v44  ;;  %2176 = vmatprep.subr.mxu0 %v1672_v45  ;;  %v1755_v41 = vld [vmem:[%s4105_s0 + $0xab8] sm:$0xff]  ;;  %v1770_v43 = vld [vmem:[%s4105_s0 + $0xb30] sm:$0xff] }
  0xa2   :  { %2211 = vmatprep.subr.mxu1 %v1704_v46  ;;  %2177 = vmatpush3.msra.mxu0 %v1656_v47  ;;  %v1722_v44 = vld [vmem:[%s4105_s0 + $0x9b0] sm:$0xff]  ;;  %v1737_v46 = vld [vmem:[%s4105_s0 + $0xa28] sm:$0xff] }
  0xa3   :  { %2212 = vmatpush3.msra.mxu1 %v1688_v48  ;;  %2178 = vmatprep.subr.mxu0 %v1671_v49  ;;  %v1754_v45 = vld [vmem:[%s4105_s0 + $0xab0] sm:$0xff]  ;;  %v1769_v47 = vld [vmem:[%s4105_s0 + $0xb28] sm:$0xff] }
  0xa4   :  { %2213 = vmatprep.subr.mxu1 %v1703_v50  ;;  %2179 = vmatpush3.msra.mxu0 %v1655_v51  ;;  %v1721_v48 = vld [vmem:[%s4105_s0 + $0x9a8] sm:$0xff]  ;;  %v1736_v50 = vld [vmem:[%s4105_s0 + $0xa20] sm:$0xff] }
  0xa5   :  { %2214 = vmatpush3.msra.mxu1 %v1687_v52  ;;  %2180 = vmatprep.subr.mxu0 %v1670_v53  ;;  %v1753_v49 = vld [vmem:[%s4105_s0 + $0xaa8] sm:$0xff]  ;;  %v1768_v51 = vld [vmem:[%s4105_s0 + $0xb20] sm:$0xff] }
  0xa6   :  { %2215 = vmatprep.subr.mxu1 %v1702_v54  ;;  %2181 = vmatpush3.msra.mxu0 %v1654_v55  ;;  %v1720_v52 = vld [vmem:[%s4105_s0 + $0x9a0] sm:$0xff]  ;;  %v1735_v54 = vld [vmem:[%s4105_s0 + $0xa18] sm:$0xff] }
  0xa7   :  { %2216 = vmatpush3.msra.mxu1 %v1686_v56  ;;  %2182 = vmatprep.subr.mxu0 %v1669_v57  ;;  %v1752_v53 = vld [vmem:[%s4105_s0 + $0xaa0] sm:$0xff]  ;;  %v1767_v55 = vld [vmem:[%s4105_s0 + $0xb18] sm:$0xff] }
  0xa8   :  { %2217 = vmatprep.subr.mxu1 %v1701_v58  ;;  %2183 = vmatpush3.msra.mxu0 %v1653_v59  ;;  %v1719_v56 = vld [vmem:[%s4105_s0 + $0x998] sm:$0xff]  ;;  %v1734_v58 = vld [vmem:[%s4105_s0 + $0xa10] sm:$0xff] }
  0xa9   :  { %2218 = vmatpush3.msra.mxu1 %v1685_v60  ;;  %2184 = vmatprep.subr.mxu0 %v1668_v61  ;;  %v1751_v57 = vld [vmem:[%s4105_s0 + $0xa98] sm:$0xff]  ;;  %v1766_v59 = vld [vmem:[%s4105_s0 + $0xb10] sm:$0xff] }
  0xaa   :  { %2219 = vmatprep.subr.mxu1 %v1700_v62  ;;  %2185 = vmatpush3.msra.mxu0 %v1652_v63  ;;  %v1718_v60 = vld [vmem:[%s4105_s0 + $0x990] sm:$0xff]  ;;  %v1733_v62 = vld [vmem:[%s4105_s0 + $0xa08] sm:$0xff] }
  0xab   :  { %1142 = vmatprep.mubr.f32.mxu0 %v2489_v1  ;;  %2220 = vmatpush3.msra.mxu1 %v1684_v0  ;;  %v1750_v61 = vld [vmem:[%s4105_s0 + $0xa90] sm:$0xff]  ;;  %v1765_v63 = vld [vmem:[%s4105_s0 + $0xb08] sm:$0xff]  ;;  %v1732_v1 = vld [vmem:[%s4105_s0 + $0xa00] sm:$0xff] }
  0xac   :  { %1212 = vmatprep.mubr.f32.mxu1 %v2490_v4  ;;  %1143 = vmatmul.mubr.f32.vlgmr.msra.gmra.mxu0 %v2491_v7  ;;  %v1717_v0 = vld [vmem:[%s4105_s0 + $0x988] sm:$0xff]  ;;  %v1764_v4 = vld [vmem:[%s4105_s0 + $0xb00] sm:$0xff] }
  0xad   :  { %1213 = vmatmul.mubr.f32.vlgmr.msra.gmra.mxu1 %v2492_v8  ;;  %2224 = vmatprep.subr.mxu0 %v1747_v2  ;;  %v1749_v2 = vld [vmem:[%s4105_s0 + $0xa88] sm:$0xff]  ;;  %v1748_v7 = vld [vmem:[%s4105_s0 + $0xa80] sm:$0xff]  ;;  %v1795_v8 = vld [vmem:[%s4105_s0 + $0xbf8] sm:$0xff] }
  0xae   :  { %2259 = vmatprep.subr.mxu1 %v1779_v3  ;;  %2225 = vmatpush3.msra.mxu0 %v1731_v5  ;;  %v1716_v3 = vld [vmem:[%s4105_s0 + $0x980] sm:$0xff]  ;;  %v2493_v5 = vld [vmem:[%s4106_s1 + $0x28] sm:$0xff] }
  0xaf   :  { %2260 = vmatpush3.msra.mxu1 %v1763_v6  ;;  %2226 = vmatprep.subr.mxu0 %v1746_v9  ;;  %v1811_v6 = vld [vmem:[%s4105_s0 + $0xc78] sm:$0xff]  ;;  %v2494_v9 = vld [vmem:[%s4106_s1 + $0x20] sm:$0xff] }
  0xb0   :  { %2261 = vmatprep.subr.mxu1 %v1778_v10  ;;  %2227 = vmatpush3.msra.mxu0 %v1730_v11  ;;  %v1810_v10 = vld [vmem:[%s4105_s0 + $0xc70] sm:$0xff]  ;;  %v1843_v11 = vld [vmem:[%s4105_s0 + $0xd78] sm:$0xff] }
  0xb1   :  { %2262 = vmatpush3.msra.mxu1 %v1762_v12  ;;  %2228 = vmatprep.subr.mxu0 %v1745_v13  ;;  %v2495_v12 = vld [vmem:[%s4106_s1 + $0x38] sm:$0xff]  ;;  %v1794_v13 = vld [vmem:[%s4105_s0 + $0xbf0] sm:$0xff] }
  0xb2   :  { %2263 = vmatprep.subr.mxu1 %v1777_v14  ;;  %2229 = vmatpush3.msra.mxu0 %v1729_v15  ;;  %v1827_v14 = vld [vmem:[%s4105_s0 + $0xcf8] sm:$0xff]  ;;  %v2496_v15 = vld [vmem:[%s4106_s1 + $0x30] sm:$0xff] }
  0xb3   :  { %2264 = vmatpush3.msra.mxu1 %v1761_v17  ;;  %2230 = vmatprep.subr.mxu0 %v1744_v18  ;;  %v1809_v17 = vld [vmem:[%s4105_s0 + $0xc68] sm:$0xff]  ;;  %v1842_v18 = vld [vmem:[%s4105_s0 + $0xd70] sm:$0xff] }
  0xb4   :  { %2265 = vmatprep.subr.mxu1 %v1776_v19  ;;  %2231 = vmatpush3.msra.mxu0 %v1728_v20  ;;  %v1793_v19 = vld [vmem:[%s4105_s0 + $0xbe8] sm:$0xff]  ;;  %v1826_v20 = vld [vmem:[%s4105_s0 + $0xcf0] sm:$0xff] }
  0xb5   :  { %2266 = vmatpush3.msra.mxu1 %v1760_v21  ;;  %2232 = vmatprep.subr.mxu0 %v1743_v22  ;;  %v1808_v21 = vld [vmem:[%s4105_s0 + $0xc60] sm:$0xff]  ;;  %v1841_v22 = vld [vmem:[%s4105_s0 + $0xd68] sm:$0xff] }
  0xb6   :  { %2267 = vmatprep.subr.mxu1 %v1775_v23  ;;  %2233 = vmatpush3.msra.mxu0 %v1727_v24  ;;  %v1792_v23 = vld [vmem:[%s4105_s0 + $0xbe0] sm:$0xff]  ;;  %v1825_v24 = vld [vmem:[%s4105_s0 + $0xce8] sm:$0xff] }
  0xb7   :  { %2268 = vmatpush3.msra.mxu1 %v1759_v25  ;;  %2234 = vmatprep.subr.mxu0 %v1742_v26  ;;  %v1807_v25 = vld [vmem:[%s4105_s0 + $0xc58] sm:$0xff]  ;;  %v1840_v26 = vld [vmem:[%s4105_s0 + $0xd60] sm:$0xff] }
  0xb8   :  { %2269 = vmatprep.subr.mxu1 %v1774_v27  ;;  %2235 = vmatpush3.msra.mxu0 %v1726_v28  ;;  %v1791_v27 = vld [vmem:[%s4105_s0 + $0xbd8] sm:$0xff]  ;;  %v1824_v28 = vld [vmem:[%s4105_s0 + $0xce0] sm:$0xff] }
  0xb9   :  { %2270 = vmatpush3.msra.mxu1 %v1758_v29  ;;  %2236 = vmatprep.subr.mxu0 %v1741_v30  ;;  %v1806_v29 = vld [vmem:[%s4105_s0 + $0xc50] sm:$0xff]  ;;  %v1839_v30 = vld [vmem:[%s4105_s0 + $0xd58] sm:$0xff] }
  0xba   :  { %2271 = vmatprep.subr.mxu1 %v1773_v31  ;;  %2237 = vmatpush3.msra.mxu0 %v1725_v32  ;;  %v1790_v31 = vld [vmem:[%s4105_s0 + $0xbd0] sm:$0xff]  ;;  %v1823_v32 = vld [vmem:[%s4105_s0 + $0xcd8] sm:$0xff] }
  0xbb   :  { %2272 = vmatpush3.msra.mxu1 %v1757_v33  ;;  %2238 = vmatprep.subr.mxu0 %v1740_v34  ;;  %v1805_v33 = vld [vmem:[%s4105_s0 + $0xc48] sm:$0xff]  ;;  %v1838_v34 = vld [vmem:[%s4105_s0 + $0xd50] sm:$0xff] }
  0xbc   :  { %2273 = vmatprep.subr.mxu1 %v1772_v35  ;;  %2239 = vmatpush3.msra.mxu0 %v1724_v36  ;;  %v1789_v35 = vld [vmem:[%s4105_s0 + $0xbc8] sm:$0xff]  ;;  %v1822_v36 = vld [vmem:[%s4105_s0 + $0xcd0] sm:$0xff] }
  0xbd   :  { %2274 = vmatpush3.msra.mxu1 %v1756_v37  ;;  %2240 = vmatprep.subr.mxu0 %v1739_v38  ;;  %v1804_v37 = vld [vmem:[%s4105_s0 + $0xc40] sm:$0xff]  ;;  %v1837_v38 = vld [vmem:[%s4105_s0 + $0xd48] sm:$0xff] }
  0xbe   :  { %2275 = vmatprep.subr.mxu1 %v1771_v39  ;;  %2241 = vmatpush3.msra.mxu0 %v1723_v40  ;;  %v1788_v39 = vld [vmem:[%s4105_s0 + $0xbc0] sm:$0xff]  ;;  %v1821_v40 = vld [vmem:[%s4105_s0 + $0xcc8] sm:$0xff] }
  0xbf   :  { %2276 = vmatpush3.msra.mxu1 %v1755_v41  ;;  %2242 = vmatprep.subr.mxu0 %v1738_v42  ;;  %v1803_v41 = vld [vmem:[%s4105_s0 + $0xc38] sm:$0xff]  ;;  %v1836_v42 = vld [vmem:[%s4105_s0 + $0xd40] sm:$0xff] }
  0xc0   :  { %2277 = vmatprep.subr.mxu1 %v1770_v43  ;;  %2243 = vmatpush3.msra.mxu0 %v1722_v44  ;;  %v1787_v43 = vld [vmem:[%s4105_s0 + $0xbb8] sm:$0xff]  ;;  %v1820_v44 = vld [vmem:[%s4105_s0 + $0xcc0] sm:$0xff] }
  0xc1   :  { %2278 = vmatpush3.msra.mxu1 %v1754_v45  ;;  %2244 = vmatprep.subr.mxu0 %v1737_v46  ;;  %v1802_v45 = vld [vmem:[%s4105_s0 + $0xc30] sm:$0xff]  ;;  %v1835_v46 = vld [vmem:[%s4105_s0 + $0xd38] sm:$0xff] }
  0xc2   :  { %2279 = vmatprep.subr.mxu1 %v1769_v47  ;;  %2245 = vmatpush3.msra.mxu0 %v1721_v48  ;;  %v1786_v47 = vld [vmem:[%s4105_s0 + $0xbb0] sm:$0xff]  ;;  %v1819_v48 = vld [vmem:[%s4105_s0 + $0xcb8] sm:$0xff] }
  0xc3   :  { %2280 = vmatpush3.msra.mxu1 %v1753_v49  ;;  %2246 = vmatprep.subr.mxu0 %v1736_v50  ;;  %v1801_v49 = vld [vmem:[%s4105_s0 + $0xc28] sm:$0xff]  ;;  %v1834_v50 = vld [vmem:[%s4105_s0 + $0xd30] sm:$0xff] }
  0xc4   :  { %2281 = vmatprep.subr.mxu1 %v1768_v51  ;;  %2247 = vmatpush3.msra.mxu0 %v1720_v52  ;;  %v1785_v51 = vld [vmem:[%s4105_s0 + $0xba8] sm:$0xff]  ;;  %v1818_v52 = vld [vmem:[%s4105_s0 + $0xcb0] sm:$0xff] }
  0xc5   :  { %2282 = vmatpush3.msra.mxu1 %v1752_v53  ;;  %2248 = vmatprep.subr.mxu0 %v1735_v54  ;;  %v1800_v53 = vld [vmem:[%s4105_s0 + $0xc20] sm:$0xff]  ;;  %v1833_v54 = vld [vmem:[%s4105_s0 + $0xd28] sm:$0xff] }
  0xc6   :  { %2283 = vmatprep.subr.mxu1 %v1767_v55  ;;  %2249 = vmatpush3.msra.mxu0 %v1719_v56  ;;  %v1784_v55 = vld [vmem:[%s4105_s0 + $0xba0] sm:$0xff]  ;;  %v1817_v56 = vld [vmem:[%s4105_s0 + $0xca8] sm:$0xff] }
  0xc7   :  { %2284 = vmatpush3.msra.mxu1 %v1751_v57  ;;  %2250 = vmatprep.subr.mxu0 %v1734_v58  ;;  %v1799_v57 = vld [vmem:[%s4105_s0 + $0xc18] sm:$0xff]  ;;  %v1832_v58 = vld [vmem:[%s4105_s0 + $0xd20] sm:$0xff] }
  0xc8   :  { %2285 = vmatprep.subr.mxu1 %v1766_v59  ;;  %2251 = vmatpush3.msra.mxu0 %v1718_v60  ;;  %v1783_v59 = vld [vmem:[%s4105_s0 + $0xb98] sm:$0xff]  ;;  %v1816_v60 = vld [vmem:[%s4105_s0 + $0xca0] sm:$0xff] }
  0xc9   :  { %2286 = vmatpush3.msra.mxu1 %v1750_v61  ;;  %2252 = vmatprep.subr.mxu0 %v1733_v62  ;;  %v1798_v62 = vld [vmem:[%s4105_s0 + $0xc10] sm:$0xff] }
  0xca   :  { %2287 = vmatprep.subr.mxu1 %v1765_v63  ;;  %2253 = vmatpush3.msra.mxu0 %v1717_v0  ;;  %v1831_v63 = vld [vmem:[%s4105_s0 + $0xd18] sm:$0xff]  ;;  %v1782_v0 = vld [vmem:[%s4105_s0 + $0xb90] sm:$0xff] }
  0xcb   :  { %1282 = vmatprep.mubr.f32.mxu0 %v2493_v5  ;;  %2254 = vmatprep.subr.mxu0 %v1732_v1  ;;  %v1815_v1 = vld [vmem:[%s4105_s0 + $0xc98] sm:$0xff] }
  0xcc   :  { %2288 = vmatpush3.msra.mxu1 %v1749_v2  ;;  %2255 = vmatpush3.msra.mxu0 %v1716_v3  ;;  %v1797_v3 = vld [vmem:[%s4105_s0 + $0xc08] sm:$0xff] }
  0xcd   :  { %2289 = vmatprep.subr.mxu1 %v1764_v4  ;;  %1283 = vmatmul.mubr.f32.vlgmr.msra.gmra.mxu0 %v2494_v9  ;;  %v1830_v4 = vld [vmem:[%s4105_s0 + $0xd10] sm:$0xff]  ;;  %v1829_v9 = vld [vmem:[%s4105_s0 + $0xd08] sm:$0xff] }
  0xce   :  { %2294 = vmatprep.subr.mxu0 %v1811_v6  ;;  %2290 = vmatpush3.msra.mxu1 %v1748_v7  ;;  %v1781_v6 = vld [vmem:[%s4105_s0 + $0xb88] sm:$0xff]  ;;  %v1814_v7 = vld [vmem:[%s4105_s0 + $0xc90] sm:$0xff] }
  0xcf   :  { %1352 = vmatprep.mubr.f32.mxu1 %v2495_v12  ;;  %2295 = vmatpush3.msra.mxu0 %v1795_v8  ;;  %v1796_v8 = vld [vmem:[%s4105_s0 + $0xc00] sm:$0xff] }
  0xd0   :  { %1353 = vmatmul.mubr.f32.vlgmr.msra.gmra.mxu1 %v2496_v15  ;;  %2296 = vmatprep.subr.mxu0 %v1810_v10  ;;  %v1780_v10 = vld [vmem:[%s4105_s0 + $0xb80] sm:$0xff] }
  0xd1   :  { %2329 = vmatprep.subr.mxu1 %v1843_v11  ;;  %2297 = vmatpush3.msra.mxu0 %v1794_v13  ;;  %v1813_v11 = vld [vmem:[%s4105_s0 + $0xc88] sm:$0xff]  ;;  %v1828_v12 = vld [vmem:[%s4105_s0 + $0xd00] sm:$0xff]  ;;  %v1875_v13 = vld [vmem:[%s4105_s0 + $0xe78] sm:$0xff] }
  0xd2   :  { %2330 = vmatpush3.msra.mxu1 %v1827_v14  ;;  %2298 = vmatprep.subr.mxu0 %v1809_v17  ;;  %v2497_v14 = vld [vmem:[%s4106_s1 + $0x48] sm:$0xff]  ;;  %v1812_v15 = vld [vmem:[%s4105_s0 + $0xc80] sm:$0xff] }
  0xd3   :  { %2331 = vmatprep.subr.mxu1 %v1842_v18  ;;  %2299 = vmatpush3.msra.mxu0 %v1793_v19  ;;  %v2498_v17 = vld [vmem:[%s4106_s1 + $0x40] sm:$0xff]  ;;  %v1859_v18 = vld [vmem:[%s4105_s0 + $0xdf8] sm:$0xff]  ;;  %v1874_v19 = vld [vmem:[%s4105_s0 + $0xe70] sm:$0xff] }
  0xd4   :  { %2332 = vmatpush3.msra.mxu1 %v1826_v20  ;;  %2300 = vmatprep.subr.mxu0 %v1808_v21  ;;  %v2499_v20 = vld [vmem:[%s4106_s1 + $0x58] sm:$0xff]  ;;  %v1858_v21 = vld [vmem:[%s4105_s0 + $0xdf0] sm:$0xff] }
  0xd5   :  { %2333 = vmatprep.subr.mxu1 %v1841_v22  ;;  %2301 = vmatpush3.msra.mxu0 %v1792_v23  ;;  %v1891_v22 = vld [vmem:[%s4105_s0 + $0xef8] sm:$0xff]  ;;  %v2500_v23 = vld [vmem:[%s4106_s1 + $0x50] sm:$0xff] }
  0xd6   :  { %2334 = vmatpush3.msra.mxu1 %v1825_v24  ;;  %2302 = vmatprep.subr.mxu0 %v1807_v25  ;;  %v1873_v24 = vld [vmem:[%s4105_s0 + $0xe68] sm:$0xff] }
  0xd7   :  { %2335 = vmatprep.subr.mxu1 %v1840_v26  ;;  %2303 = vmatpush3.msra.mxu0 %v1791_v27  ;;  %v1857_v25 = vld [vmem:[%s4105_s0 + $0xde8] sm:$0xff]  ;;  %v1890_v26 = vld [vmem:[%s4105_s0 + $0xef0] sm:$0xff]  ;;  %v1872_v27 = vld [vmem:[%s4105_s0 + $0xe60] sm:$0xff] }
  0xd8   :  { %2336 = vmatpush3.msra.mxu1 %v1824_v28  ;;  %2304 = vmatprep.subr.mxu0 %v1806_v29  ;;  %v1856_v28 = vld [vmem:[%s4105_s0 + $0xde0] sm:$0xff]  ;;  %v1889_v29 = vld [vmem:[%s4105_s0 + $0xee8] sm:$0xff] }
  0xd9   :  { %2337 = vmatprep.subr.mxu1 %v1839_v30  ;;  %2305 = vmatpush3.msra.mxu0 %v1790_v31  ;;  %v1871_v30 = vld [vmem:[%s4105_s0 + $0xe58] sm:$0xff] }
  0xda   :  { %2338 = vmatpush3.msra.mxu1 %v1823_v32  ;;  %2306 = vmatprep.subr.mxu0 %v1805_v33  ;;  %v1855_v31 = vld [vmem:[%s4105_s0 + $0xdd8] sm:$0xff]  ;;  %v1888_v32 = vld [vmem:[%s4105_s0 + $0xee0] sm:$0xff]  ;;  %v1870_v33 = vld [vmem:[%s4105_s0 + $0xe50] sm:$0xff] }
  0xdb   :  { %2339 = vmatprep.subr.mxu1 %v1838_v34  ;;  %2307 = vmatpush3.msra.mxu0 %v1789_v35  ;;  %v1854_v34 = vld [vmem:[%s4105_s0 + $0xdd0] sm:$0xff]  ;;  %v1887_v35 = vld [vmem:[%s4105_s0 + $0xed8] sm:$0xff] }
  0xdc   :  { %2340 = vmatpush3.msra.mxu1 %v1822_v36  ;;  %2308 = vmatprep.subr.mxu0 %v1804_v37  ;;  %v1869_v36 = vld [vmem:[%s4105_s0 + $0xe48] sm:$0xff] }
  0xdd   :  { %2341 = vmatprep.subr.mxu1 %v1837_v38  ;;  %2309 = vmatpush3.msra.mxu0 %v1788_v39  ;;  %v1853_v37 = vld [vmem:[%s4105_s0 + $0xdc8] sm:$0xff]  ;;  %v1886_v38 = vld [vmem:[%s4105_s0 + $0xed0] sm:$0xff]  ;;  %v1868_v39 = vld [vmem:[%s4105_s0 + $0xe40] sm:$0xff] }
  0xde   :  { %2342 = vmatpush3.msra.mxu1 %v1821_v40  ;;  %2310 = vmatprep.subr.mxu0 %v1803_v41  ;;  %v1852_v40 = vld [vmem:[%s4105_s0 + $0xdc0] sm:$0xff]  ;;  %v1885_v41 = vld [vmem:[%s4105_s0 + $0xec8] sm:$0xff] }
  0xdf   :  { %2343 = vmatprep.subr.mxu1 %v1836_v42  ;;  %2311 = vmatpush3.msra.mxu0 %v1787_v43  ;;  %v1867_v43 = vld [vmem:[%s4105_s0 + $0xe38] sm:$0xff] }
  0xe0   :  { %2344 = vmatpush3.msra.mxu1 %v1820_v44  ;;  %2312 = vmatprep.subr.mxu0 %v1802_v45  ;;  %v1851_v44 = vld [vmem:[%s4105_s0 + $0xdb8] sm:$0xff]  ;;  %v1884_v45 = vld [vmem:[%s4105_s0 + $0xec0] sm:$0xff] }
  0xe1   :  { %2345 = vmatprep.subr.mxu1 %v1835_v46  ;;  %2313 = vmatpush3.msra.mxu0 %v1786_v47  ;;  %v1866_v46 = vld [vmem:[%s4105_s0 + $0xe30] sm:$0xff] }
  0xe2   :  { %2346 = vmatpush3.msra.mxu1 %v1819_v48  ;;  %2314 = vmatprep.subr.mxu0 %v1801_v49  ;;  %v1850_v47 = vld [vmem:[%s4105_s0 + $0xdb0] sm:$0xff]  ;;  %v1883_v48 = vld [vmem:[%s4105_s0 + $0xeb8] sm:$0xff] }
  0xe3   :  { %2347 = vmatprep.subr.mxu1 %v1834_v50  ;;  %2315 = vmatpush3.msra.mxu0 %v1785_v51  ;;  %v1865_v50 = vld [vmem:[%s4105_s0 + $0xe28] sm:$0xff] }
  0xe4   :  { %2348 = vmatpush3.msra.mxu1 %v1818_v52  ;;  %2316 = vmatprep.subr.mxu0 %v1800_v53  ;;  %v1924_v42 = vpop.f32.mrf.mxu0  ;;  %v1849_v51 = vld [vmem:[%s4105_s0 + $0xda8] sm:$0xff]  ;;  %v1882_v52 = vld [vmem:[%s4105_s0 + $0xeb0] sm:$0xff]  ;;  %v1864_v53 = vld [vmem:[%s4105_s0 + $0xe20] sm:$0xff] }
  0xe5   :  { %2349 = vmatprep.subr.mxu1 %v1833_v54  ;;  %v1959_v61 = vpop.f32.mrf.mxu1  ;;  %2317 = vmatpush3.msra.mxu0 %v1784_v55  ;;  %v1848_v55 = vld [vmem:[%s4105_s0 + $0xda0] sm:$0xff] }
  0xe6   :  { %2350 = vmatpush3.msra.mxu1 %v1817_v56  ;;  %2318 = vmatprep.subr.mxu0 %v1799_v57  ;;  %v1925_v49 = vpop.f32.mrf.mxu0  ;;  %v1881_v56 = vld [vmem:[%s4105_s0 + $0xea8] sm:$0xff]  ;;  %v1863_v57 = vld [vmem:[%s4105_s0 + $0xe18] sm:$0xff] }
  0xe7   :  { %2351 = vmatprep.subr.mxu1 %v1832_v58  ;;  %v1960_v2 = vpop.f32.mrf.mxu1  ;;  %2319 = vmatpush3.msra.mxu0 %v1783_v59  ;;  %v1926_v54 = vadd.f32 %v1925_v49, %v1924_v42  ;;  %v1847_v59 = vld [vmem:[%s4105_s0 + $0xd98] sm:$0xff] }
  0xe8   :  { %2352 = vmatpush3.msra.mxu1 %v1816_v60  ;;  %v3886_v5 = vadd.f32 %v1960_v2, %v1959_v61  ;;  %2320 = vmatprep.subr.mxu0 %v1798_v62  ;;  %v1880_v60 = vld [vmem:[%s4105_s0 + $0xea0] sm:$0xff]  ;;  %v1862_v61 = vld [vmem:[%s4105_s0 + $0xe10] sm:$0xff]  ;;  %v1879_v2 = vld [vmem:[%s4105_s0 + $0xe98] sm:$0xff] }
  0xe9   :  { %2353 = vmatprep.subr.mxu1 %v1831_v63  ;;  %2321 = vmatpush3.msra.mxu0 %v1782_v0 }
  0xea   :  { %2354 = vmatpush3.msra.mxu1 %v1815_v1  ;;  %2322 = vmatprep.subr.mxu0 %v1797_v3  ;;  %v407_v0 = vadd.f32 %v3886_v5, %v1926_v54  ;;  %v1846_v1 = vld [vmem:[%s4105_s0 + $0xd90] sm:$0xff]  ;;  %v1845_v5 = vld [vmem:[%s4105_s0 + $0xd88] sm:$0xff] }
  0xeb   :  { %2355 = vmatprep.subr.mxu1 %v1830_v4  ;;  %2323 = vmatpush3.msra.mxu0 %v1781_v6  ;;  %v1861_v4 = vld [vmem:[%s4105_s0 + $0xe08] sm:$0xff] }
  0xec   :  { %2356 = vmatpush3.msra.mxu1 %v1814_v7  ;;  %2324 = vmatprep.subr.mxu0 %v1796_v8 }
  0xed   :  { %2357 = vmatprep.subr.mxu1 %v1829_v9  ;;  %2325 = vmatpush3.msra.mxu0 %v1780_v10  ;;  %v1860_v9 = vld [vmem:[%s4105_s0 + $0xe00] sm:$0xff]  ;;  %v1878_v10 = vld [vmem:[%s4105_s0 + $0xe90] sm:$0xff] }
  0xee   :  { %1422 = vmatprep.mubr.f32.mxu0 %v2497_v14  ;;  %2358 = vmatpush3.msra.mxu1 %v1813_v11  ;;  %v1844_v11 = vld [vmem:[%s4105_s0 + $0xd80] sm:$0xff]  ;;  %v1877_v14 = vld [vmem:[%s4105_s0 + $0xe88] sm:$0xff] }
  0xef   :  { %1423 = vmatmul.mubr.f32.vlgmr.msra.gmra.mxu0 %v2498_v17  ;;  %2359 = vmatprep.subr.mxu1 %v1828_v12  ;;  %v2502_v17 = vld [vmem:[%s4106_s1 + $0x60] sm:$0xff] }
  0xf0   :  { %2364 = vmatprep.subr.mxu0 %v1875_v13  ;;  %2360 = vmatpush3.msra.mxu1 %v1812_v15  ;;  %v2501_v13 = vld [vmem:[%s4106_s1 + $0x68] sm:$0xff]  ;;  %v1876_v15 = vld [vmem:[%s4105_s0 + $0xe80] sm:$0xff] }
  0xf1   :  { %1492 = vmatprep.mubr.f32.mxu1 %v2499_v20  ;;  %2365 = vmatpush3.msra.mxu0 %v1859_v18  ;;  %v2503_v18 = vld [vmem:[%s4106_s1 + $0x70] sm:$0xff] }
  0xf2   :  { %1493 = vmatmul.mubr.f32.vlgmr.msra.gmra.mxu1 %v2500_v23  ;;  %2366 = vmatprep.subr.mxu0 %v1874_v19 }
  0xf3   :  { %2451 = vmatprep.subr.mxu1 %v2504_v16  ;;  %2367 = vmatpush3.msra.mxu0 %v1858_v21 }
  0xf4   :  { %2452 = vmatpush3.msra.mxu1 %v1891_v22  ;;  %2368 = vmatprep.subr.mxu0 %v1873_v24 }
  0xf5   :  { %2453 = vmatprep.subr.mxu1 %v2504_v16  ;;  %2369 = vmatpush3.msra.mxu0 %v1857_v25 }
  0xf6   :  { %2454 = vmatpush3.msra.mxu1 %v1890_v26  ;;  %2370 = vmatprep.subr.mxu0 %v1872_v27 }
  0xf7   :  { %2455 = vmatprep.subr.mxu1 %v2504_v16  ;;  %2371 = vmatpush3.msra.mxu0 %v1856_v28 }
  0xf8   :  { %2456 = vmatpush3.msra.mxu1 %v1889_v29  ;;  %2372 = vmatprep.subr.mxu0 %v1871_v30 }
  0xf9   :  { %2457 = vmatprep.subr.mxu1 %v2504_v16  ;;  %2373 = vmatpush3.msra.mxu0 %v1855_v31 }
  0xfa   :  { %2458 = vmatpush3.msra.mxu1 %v1888_v32  ;;  %2374 = vmatprep.subr.mxu0 %v1870_v33 }
  0xfb   :  { %2459 = vmatprep.subr.mxu1 %v2504_v16  ;;  %2375 = vmatpush3.msra.mxu0 %v1854_v34 }
  0xfc   :  { %2460 = vmatpush3.msra.mxu1 %v1887_v35  ;;  %2376 = vmatprep.subr.mxu0 %v1869_v36 }
  0xfd   :  { %2461 = vmatprep.subr.mxu1 %v2504_v16  ;;  %2377 = vmatpush3.msra.mxu0 %v1853_v37 }
  0xfe   :  { %2462 = vmatpush3.msra.mxu1 %v1886_v38  ;;  %2378 = vmatprep.subr.mxu0 %v1868_v39 }
  0xff   :  { %2463 = vmatprep.subr.mxu1 %v2504_v16  ;;  %2379 = vmatpush3.msra.mxu0 %v1852_v40 }
 0x100   :  { %2464 = vmatpush3.msra.mxu1 %v1885_v41  ;;  %2380 = vmatprep.subr.mxu0 %v1867_v43 }
 0x101   :  { %2465 = vmatprep.subr.mxu1 %v2504_v16  ;;  %2381 = vmatpush3.msra.mxu0 %v1851_v44 }
 0x102   :  { %2466 = vmatpush3.msra.mxu1 %v1884_v45  ;;  %2382 = vmatprep.subr.mxu0 %v1866_v46 }
 0x103   :  { %2467 = vmatprep.subr.mxu1 %v2504_v16  ;;  %2383 = vmatpush3.msra.mxu0 %v1850_v47 }
 0x104   :  { %2468 = vmatpush3.msra.mxu1 %v1883_v48  ;;  %2384 = vmatprep.subr.mxu0 %v1865_v50 }
 0x105   :  { %2469 = vmatprep.subr.mxu1 %v2504_v16  ;;  %2385 = vmatpush3.msra.mxu0 %v1849_v51 }
 0x106   :  { %2470 = vmatpush3.msra.mxu1 %v1882_v52  ;;  %v1994_v58 = vpop.f32.mrf.mxu0  ;;  %2386 = vmatprep.subr.mxu0 %v1864_v53 }
 0x107   :  { %2471 = vmatprep.subr.mxu1 %v2504_v16  ;;  %2387 = vmatpush3.msra.mxu0 %v1848_v55 }
 0x108   :  { %2472 = vmatpush3.msra.mxu1 %v1881_v56  ;;  %v1995_v62 = vpop.f32.mrf.mxu0  ;;  %v2029_v63 = vpop.f32.mrf.mxu1  ;;  %2388 = vmatprep.subr.mxu0 %v1863_v57 }
 0x109   :  { %2473 = vmatprep.subr.mxu1 %v2504_v16  ;;  %v1996_v3 = vadd.f32 %v1995_v62, %v1994_v58  ;;  %2389 = vmatpush3.msra.mxu0 %v1847_v59 }
 0x10a   :  { %2474 = vmatpush3.msra.mxu1 %v1880_v60  ;;  %v2030_v6 = vpop.f32.mrf.mxu1  ;;  %2390 = vmatprep.subr.mxu0 %v1862_v61 }
 0x10b   :  { %2475 = vmatprep.subr.mxu1 %v2504_v16  ;;  %v477_v7 = vadd.f32 %v1996_v3, %v407_v0  ;;  %v2031_v8 = vadd.f32 %v2030_v6, %v2029_v63  ;;  %2391 = vmatpush3.msra.mxu0 %v1846_v1  ;;  %v29_v1 = vld [vmem:[%s4107_s2] sm:$0xff] }
 0x10c   :  { %2476 = vmatpush3.msra.mxu1 %v1879_v2  ;;  %2392 = vmatprep.subr.mxu0 %v1861_v4 }
 0x10d   :  { %2477 = vmatprep.subr.mxu1 %v2504_v16  ;;  %v547_v12 = vadd.f32 %v2031_v8, %v477_v7  ;;  %2393 = vmatpush3.msra.mxu0 %v1845_v5 }
 0x10e   :  { %1562 = vmatprep.mubr.f32.mxu0 %v2501_v13  ;;  %2394 = vmatprep.subr.mxu0 %v1860_v9 }
 0x10f   :  { %2478 = vmatpush3.msra.mxu1 %v1878_v10  ;;  %2395 = vmatpush3.msra.mxu0 %v1844_v11 }
 0x110   :  { %2479 = vmatprep.subr.mxu1 %v2504_v16  ;;  %1563 = vmatmul.mubr.f32.vlgmr.msra.gmra.mxu0 %v2502_v17 }
 0x111   :  { %2480 = vmatpush3.msra.mxu1 %v1877_v14  ;;  %2483 = vmatprep.mubr.msk.f32.mxu1 %vm2505_vm0, %v2504_v16 }
 0x112   :  { %2481 = vmatprep.subr.mxu1 %v2504_v16 }
 0x113   :  { %2482 = vmatpush3.msra.mxu1 %v1876_v15 }
 0x114   :  { %2484 = vmatmul.mubr.f32.vlgmr.msra.gmra.mxu1 %v2503_v18 }
 0x128   :  { %v2064_v19 = vpop.f32.mrf.mxu0 }
 0x12a   :  { %v2065_v20 = vpop.f32.mrf.mxu0  ;;  %v2099_v21 = vpop.f32.mrf.mxu1 }
 0x12b   :  { %v2066_v22 = vadd.f32 %v2065_v20, %v2064_v19 }
 0x12c   :  { %v2100_v23 = vpop.f32.mrf.mxu1 }
 0x12d   :  { %v617_v24 = vadd.f32 %v2066_v22, %v547_v12  ;;  %v2101_v25 = vadd.f32 %v2100_v23, %v2099_v21 }
 0x12f   :  { %v687_v26 = vadd.f32 %v2101_v25, %v617_v24 }
 0x14a   :  { %v2134_v27 = vpop.f32.mrf.mxu0 }
 0x14c   :  { %v2135_v28 = vpop.f32.mrf.mxu0  ;;  %v826_v29 = vpop.f32.mrf.mxu1 }
 0x14d   :  { %v2136_v30 = vadd.f32 %v2135_v28, %v2134_v27 }
 0x14e   :  { %v2450_v31 = vpop.f32.mrf.mxu1 }
 0x14f   :  { %v757_v16 = vadd.f32 %v2136_v30, %v687_v26 }
 0x151   :  { %v827_v32 = vadd.f32 %v826_v29, %v757_v16 }
 0x153   :  { %v831_v0 = vsel %vm830_vm1, %v827_v32, 0.0 }
 0x16c   :  { %v2186_v33 = vpop.f32.mrf.mxu0 }
 0x16d   :  { %v2221_v34 = vpop.f32.mrf.mxu1 }
 0x16e   :  { %v2187_v35 = vpop.f32.mrf.mxu0 }
 0x16f   :  { %v2222_v37 = vpop.f32.mrf.mxu1  ;;  %v2188_v40 = vadd.f32 %v2187_v35, %v2186_v33 }
 0x170   :  { %v2223_v41 = vadd.f32 %v2222_v37, %v2221_v34 }
 0x172   :  { %v1215_v45 = vadd.f32 %v2223_v41, %v2188_v40 }
 0x18d   :  { %v2256_v36 = vpop.f32.mrf.mxu0 }
 0x18f   :  { %v2257_v38 = vpop.f32.mrf.mxu0 }
 0x190   :  { %v2291_v39 = vpop.f32.mrf.mxu1  ;;  %v2258_v43 = vadd.f32 %v2257_v38, %v2256_v36 }
 0x192   :  { %v2292_v44 = vpop.f32.mrf.mxu1  ;;  %v1285_v48 = vadd.f32 %v2258_v43, %v1215_v45 }
 0x193   :  { %v2293_v49 = vadd.f32 %v2292_v44, %v2291_v39 }
 0x195   :  { %v1355_v52 = vadd.f32 %v2293_v49, %v1285_v48 }
 0x1af   :  { %v2326_v42 = vpop.f32.mrf.mxu0 }
 0x1b1   :  { %v2327_v46 = vpop.f32.mrf.mxu0 }
 0x1b2   :  { %v2361_v47 = vpop.f32.mrf.mxu1  ;;  %v2328_v50 = vadd.f32 %v2327_v46, %v2326_v42 }
 0x1b4   :  { %v2362_v51 = vpop.f32.mrf.mxu1  ;;  %v1425_v53 = vadd.f32 %v2328_v50, %v1355_v52 }
 0x1b5   :  { %v2363_v54 = vadd.f32 %v2362_v51, %v2361_v47 }
 0x1b7   :  { %v1495_v57 = vadd.f32 %v2363_v54, %v1425_v53 }
 0x1d0   :  { %v2396_v55 = vpop.f32.mrf.mxu0 }
 0x1d2   :  { %v2397_v56 = vpop.f32.mrf.mxu0 }
 0x1d3   :  { %v2398_v58 = vadd.f32 %v2397_v56, %v2396_v55 }
 0x1d4   :  { %v1634_v59 = vpop.f32.mrf.mxu1 }
 0x1d5   :  { %v1565_v60 = vadd.f32 %v2398_v58, %v1495_v57 }
 0x1d6   :  { %v2485_v61 = vpop.f32.mrf.mxu1 }
 0x1d7   :  { %v1635_v62 = vadd.f32 %v1634_v59, %v1565_v60 }
 0x1d9   :  { %v1638_v63 = vsel %vm830_vm1, %v1635_v62, 0.0 }
 0x1da   :  { %1639 = vadd.xlane.f32.xlu0 %v1638_v63 }
 0x1de   :  { %832 = vadd.xlane.f32.xlu0 %v831_v0 }
 0x263   :  { %v1640_v2 = vpop.xlane.xlu0 %1639 }
 0x264   :  { %v1641_v3 = vadd.f32 %v1640_v2, %v29_v1 }
 0x266   :  { %1643 = vrot.lane.b32.xlu1 %v1641_v3, %s2506_s6 }
 0x267   :  { %v833_v4 = vpop.xlane.xlu0 %832 }
 0x268   :  { %v834_v6 = vadd.f32 %v833_v4, %v29_v1 }
 0x26a   :  { %836 = vst.msk [vmem:[%s4108_s3] sm:$0xff] %vm835_vm2, %v834_v6 }
 0x2d8   :  { %v1644_v5 = vpop.permute.xlu1 %1643 }
 0x2d9   :  { %1647 = vst.msk [vmem:[%s4108_s3] sm:$0xff] %vm1646_vm3, %v1644_v5 }

</bundles_post_ra>
